<compile_context>
chip_gen: v6e
topology: v6e:2x2x1
jax: 0.10.0
libtpu: 0.0.40
codegen_flags: <defaults>
</compile_context>

<pallas_src>
import functools

import jax
import jax.numpy as jnp
from jax.experimental import pallas as pl
from jax.experimental.pallas import tpu as pltpu


_LANE = 128


# ----------------------------------------------------------------------------
# Fused kernel (one image per grid step):
#   conv (9 shifted dot-accumulates) + bias + ReLU + masked-sum GAP + head
# ----------------------------------------------------------------------------
def _fused_concat_model_kernel(img_ref, wt_ref, cb_ref, pool_ref, meta_ref,
                               w1a_ref, w1b_ref, b1_ref, w2_ref, b2_ref,
                               o_ref, *, slab, wp, kh, kw):
    # img_ref : ((H+2)*(W+2), C) f32  -- one image, channels-last, rows flat
    # wt_ref  : (kh*kw, C, OC) bf16   -- tap (dy,dx) weight laid out as (C,OC)
    # Slab trick: for tap (dy,dx) the contiguous rows [s, s+slab) of the
    # flattened padded image, s = dy*(W+2)+dx, put the conv contribution of
    # output pixel (y,x) at slab row j = y*(W+2)+x for every tap; rows with
    # (j % (W+2)) >= W are wrap-around garbage and are masked out of the GAP.
    acc = None
    for t in range(kh * kw):
        s = (t // kw) * wp + (t % kw)
        slab_t = img_ref[pl.ds(s, slab), :].astype(jnp.bfloat16)
        part = jnp.dot(slab_t, wt_ref[t], preferred_element_type=jnp.float32)
        acc = part if acc is None else acc + part
    feat = jnp.maximum(acc + cb_ref[...], 0.0)                  # (slab, OC)

    # Global average pool: pool_ref holds 1/(H*W) on real-pixel rows, 0 on
    # the garbage rows -> one VPU multiply + one sublane-axis reduce.
    x1 = jnp.sum(feat * pool_ref[...], axis=0, keepdims=True)   # (1, OC) f32

    # Head: cat(x1, meta) @ W1 == x1 @ W1[:OC] + meta @ W1[OC:]
    h = jnp.dot(x1.astype(jnp.bfloat16), w1a_ref[...],
                preferred_element_type=jnp.float32)             # (1, H1P)
    m = meta_ref[...]                                           # (1, 2) f32
    w1b = w1b_ref[...]                                          # (2, H1P)
    # K=2 meta contribution stays on the VPU (no MXU round-trip for 2 MACs).
    h = h + m[:, 0:1] * w1b[0:1, :] + m[:, 1:2] * w1b[1:2, :] + b1_ref[...]
    h = jnp.maximum(h, 0.0)                                     # relu(fc1)
    # fc2 into a lane-dense (multiple-of-128, zero-padded) output block.
    o_ref[...] = (jnp.dot(h.astype(jnp.bfloat16), w2_ref[...],
                          preferred_element_type=jnp.float32) + b2_ref[...])


# ----------------------------------------------------------------------------
# Wrapper: single jit around layout prep + pallas_call + final slice
# ----------------------------------------------------------------------------
@jax.jit
def concat_model_forward(image, meta, conv_w, conv_b, w1, b1, w2, b2):
    B, C, H, W = image.shape
    OC, _, KH, KW = conv_w.shape
    H1 = w1.shape[1]
    NC = w2.shape[1]
    H1P = pl.cdiv(H1, _LANE) * _LANE          # lane-padded fc1 width
    NCP = pl.cdiv(NC, _LANE) * _LANE          # lane-padded num_classes
    WP = W + KW - 1                           # padded row width (pad=1)
    FLAT = (H + KH - 1) * WP                  # rows of flattened padded image
    SLAB = (H - 1) * WP + W                   # rows touched by one conv tap

    # Image: NCHW -> NHWC, zero-pad spatial, flatten rows.  This is the only
    # image relayout (raw image bytes, no 9x im2col) and it fuses under jit.
    img = jnp.transpose(image, (0, 2, 3, 1)).astype(jnp.float32)
    img = jnp.pad(img, ((0, 0), (1, 1), (1, 1), (0, 0)))
    img = img.reshape(B, FLAT, C)

    # Conv weights per tap, (C, OC) layout, bf16 for a single MXU pass.
    wt = jnp.transpose(conv_w, (2, 3, 1, 0)).reshape(KH * KW, C, OC)
    wt = wt.astype(jnp.bfloat16)
    cb = conv_b.reshape(1, OC).astype(jnp.float32)

    # Pooling mask: 1/(H*W) on slab rows that are real pixels, 0 otherwise.
    j = jnp.arange(SLAB)
    pool = jnp.where((j % WP) < W, 1.0 / (H * W), 0.0)
    pool = pool.reshape(SLAB, 1).astype(jnp.float32)

    # Head weights: split-weight concat, zero-padded to lane multiples.
    w1a = jnp.zeros((OC, H1P), jnp.bfloat16).at[:, :H1].set(
        w1[:OC].astype(jnp.bfloat16))
    w1b = jnp.zeros((2, H1P), jnp.float32).at[:, :H1].set(w1[OC:])
    b1p = jnp.zeros((1, H1P), jnp.float32).at[:, :H1].set(b1.reshape(1, H1))
    w2p = jnp.zeros((H1P, NCP), jnp.bfloat16).at[:H1, :NC].set(
        w2.astype(jnp.bfloat16))
    b2p = jnp.zeros((1, NCP), jnp.float32).at[:, :NC].set(b2.reshape(1, NC))
    meta3 = meta.reshape(B, 1, 2).astype(jnp.float32)

    flops = B * (2 * SLAB * C * OC * KH * KW + 2 * SLAB * OC
                 + 2 * OC * H1P + 2 * H1P * NCP)
    bytes_accessed = (img.size * 4 + wt.size * 2 + cb.size * 4 + pool.size * 4
                      + meta3.size * 4 + w1a.size * 2 + w1b.size * 4
                      + b1p.size * 4 + w2p.size * 2 + b2p.size * 4
                      + B * NCP * 4)

    kernel = functools.partial(_fused_concat_model_kernel,
                               slab=SLAB, wp=WP, kh=KH, kw=KW)
    out = pl.pallas_call(
        kernel,
        out_shape=jax.ShapeDtypeStruct((B, 1, NCP), jnp.float32),
        grid=(B,),
        in_specs=[
            pl.BlockSpec((None, FLAT, C), lambda b: (b, 0, 0)),    # image
            pl.BlockSpec((KH * KW, C, OC), lambda b: (0, 0, 0)),   # conv taps
            pl.BlockSpec((1, OC), lambda b: (0, 0)),               # conv bias
            pl.BlockSpec((SLAB, 1), lambda b: (0, 0)),             # pool mask
            pl.BlockSpec((None, 1, 2), lambda b: (b, 0, 0)),       # meta
            pl.BlockSpec((OC, H1P), lambda b: (0, 0)),             # w1[:OC]
            pl.BlockSpec((2, H1P), lambda b: (0, 0)),              # w1[OC:]
            pl.BlockSpec((1, H1P), lambda b: (0, 0)),              # b1
            pl.BlockSpec((H1P, NCP), lambda b: (0, 0)),            # w2
            pl.BlockSpec((1, NCP), lambda b: (0, 0)),              # b2
        ],
        out_specs=pl.BlockSpec((None, 1, NCP), lambda b: (b, 0, 0)),
        compiler_params=pltpu.CompilerParams(
            dimension_semantics=("parallel",),
            vmem_limit_bytes=32 * 1024 * 1024),
        cost_estimate=pl.CostEstimate(flops=int(flops), transcendentals=0,
                                      bytes_accessed=int(bytes_accessed)),
    )(img, wt, cb, pool, meta3, w1a, w1b, b1p, w2p, b2p)
    # TODO(synk): for large H*W additionally tile the flattened spatial axis
    # (extra "arbitrary" grid dim, pooled-sum VMEM scratch, halo rows).
    return out[:, 0, :NC]                                        # (B, NC)


# ----------------------------------------------------------------------------
if __name__ == "__main__":
    key = jax.random.PRNGKey(0)
    B, C_in, H, W = 2, 4, 16, 16
    OC, NC = 32, 10                       # out_channels, num_classes
    H1 = (OC + 2) // 2                    # fc1 out features = 17
    ks = jax.random.split(key, 8)

    image = jax.random.normal(ks[0], (B, C_in, H, W), jnp.float32)
    meta = jax.random.normal(ks[1], (B, 2), jnp.float32)

    # Deterministic synthetic parameters (shapes from the module's __init__).
    # TODO(synk): the backbone `model` is an injected arbitrary nn.Module; a
    # Conv2d(3,pad=1)+ReLU+GAP stand-in with matching out_channels is used.
    conv_w = jax.random.normal(ks[2], (OC, C_in, 3, 3), jnp.float32) * 0.1
    conv_b = jax.random.normal(ks[3], (OC,), jnp.float32) * 0.1
    w1 = jax.random.normal(ks[4], (OC + 2, H1), jnp.float32) / jnp.sqrt(OC + 2.0)
    b1 = jax.random.normal(ks[5], (H1,), jnp.float32) * 0.1
    w2 = jax.random.normal(ks[6], (H1, NC), jnp.float32) / jnp.sqrt(float(H1))
    b2 = jax.random.normal(ks[7], (NC,), jnp.float32) * 0.1

    out = concat_model_forward(image, meta, conv_w, conv_b, w1, b1, w2, b2)
    jax.block_until_ready(out)
    assert out.shape == (B, NC)

    # Pure-JAX reference.  Every matmul operand is rounded to bf16 (as in the
    # kernel) but computed in f32: bf16 x bf16 products are exact in f32, so
    # this matches the kernel's bf16-operand / f32-accumulate MXU path up to
    # summation order.  Bias / ReLU / meta math is exact f32 on both sides.
    def r16(x):
        return x.astype(jnp.bfloat16).astype(jnp.float32)

    feat = jax.lax.conv_general_dilated(
        r16(image), r16(conv_w), window_strides=(1, 1),
        padding=((1, 1), (1, 1)),
        dimension_numbers=("NCHW", "OIHW", "NCHW"))
    feat = jnp.maximum(feat + conv_b[None, :, None, None], 0.0)
    x1_ref = jnp.mean(feat, axis=(2, 3))                         # (B, OC)
    h_ref = r16(x1_ref) @ r16(w1[:OC])
    h_ref = (h_ref + meta[:, 0:1] * w1[OC][None, :]
             + meta[:, 1:2] * w1[OC + 1][None, :] + b1[None, :])
    h_ref = jnp.maximum(h_ref, 0.0)
    ref = r16(h_ref) @ r16(w2) + b2[None, :]

    err = float(jnp.max(jnp.abs(out - ref)))
    assert jnp.allclose(out, ref, atol=5e-3, rtol=5e-3), err
    print("KERNEL_OK")
</pallas_src>

<mosaic_0001>
module attributes {stable_mosaic.version = 11 : i64} {
  func.func @_fused_concat_model_kernel(%arg0: i32, %arg1: memref<1x324x4xf32, #tpu.memory_space<vmem>>, %arg2: memref<9x4x32xbf16, #tpu.memory_space<vmem>>, %arg3: memref<1x32xf32, #tpu.memory_space<vmem>>, %arg4: memref<286x1xf32, #tpu.memory_space<vmem>>, %arg5: memref<1x1x2xf32, #tpu.memory_space<vmem>>, %arg6: memref<32x128xbf16, #tpu.memory_space<vmem>>, %arg7: memref<2x128xf32, #tpu.memory_space<vmem>>, %arg8: memref<1x128xf32, #tpu.memory_space<vmem>>, %arg9: memref<128x128xbf16, #tpu.memory_space<vmem>>, %arg10: memref<1x128xf32, #tpu.memory_space<vmem>>, %arg11: memref<1x1x128xf32, #tpu.memory_space<vmem>>) attributes {dimension_semantics = [#tpu.dimension_semantics<parallel>], iteration_bounds = array<i64: 2>, scalar_prefetch = 0 : i64, scratch_operands = 0 : i64, tpu.core_type = #tpu.core_type<tc>, window_params = [{transform_indices = @transform_0, window_bounds = array<i64: 1, 324, 4>}, {pipeline_mode = #tpu.pipeline_mode<synchronous>, transform_indices = @transform_1, window_bounds = array<i64: 9, 4, 32>}, {pipeline_mode = #tpu.pipeline_mode<synchronous>, transform_indices = @transform_2, window_bounds = array<i64: 1, 32>}, {pipeline_mode = #tpu.pipeline_mode<synchronous>, transform_indices = @transform_3, window_bounds = array<i64: 286, 1>}, {transform_indices = @transform_4, window_bounds = array<i64: 1, 1, 2>}, {pipeline_mode = #tpu.pipeline_mode<synchronous>, transform_indices = @transform_5, window_bounds = array<i64: 32, 128>}, {pipeline_mode = #tpu.pipeline_mode<synchronous>, transform_indices = @transform_6, window_bounds = array<i64: 2, 128>}, {pipeline_mode = #tpu.pipeline_mode<synchronous>, transform_indices = @transform_7, window_bounds = array<i64: 1, 128>}, {pipeline_mode = #tpu.pipeline_mode<synchronous>, transform_indices = @transform_8, window_bounds = array<i64: 128, 128>}, {pipeline_mode = #tpu.pipeline_mode<synchronous>, transform_indices = @transform_9, window_bounds = array<i64: 1, 128>}, {transform_indices = @transform_10, window_bounds = array<i64: 1, 1, 128>}]} {
    %c0 = arith.constant 0 : index
    %c0_0 = arith.constant 0 : index
    %c0_1 = arith.constant 0 : index
    %0 = vector.load %arg1[%c0, %c0_0, %c0_1] : memref<1x324x4xf32, #tpu.memory_space<vmem>>, vector<1x286x4xf32>
    %1 = vector.shape_cast %0 : vector<1x286x4xf32> to vector<286x4xf32>
    %2 = arith.truncf %1 : vector<286x4xf32> to vector<286x4xbf16>
    %c0_2 = arith.constant 0 : index
    %c0_3 = arith.constant 0 : index
    %c0_4 = arith.constant 0 : index
    %3 = vector.load %arg2[%c0_2, %c0_3, %c0_4] : memref<9x4x32xbf16, #tpu.memory_space<vmem>>, vector<1x4x32xbf16>
    %4 = vector.shape_cast %3 : vector<1x4x32xbf16> to vector<4x32xbf16>
    %cst = arith.constant dense<0.000000e+00> : vector<286x32xf32>
    %5 = tpu.matmul %2, %4, %cst {dimension_numbers = #tpu.dot_dimension_numbers<[1], [0], [0], [1], [0, 0, 1, 1], [], []>} : vector<286x4xbf16>, vector<4x32xbf16>, vector<286x32xf32> -> vector<286x32xf32>
    %c0_5 = arith.constant 0 : index
    %c1 = arith.constant 1 : index
    %c0_6 = arith.constant 0 : index
    %6 = vector.load %arg1[%c0_5, %c1, %c0_6] : memref<1x324x4xf32, #tpu.memory_space<vmem>>, vector<1x286x4xf32>
    %7 = vector.shape_cast %6 : vector<1x286x4xf32> to vector<286x4xf32>
    %8 = arith.truncf %7 : vector<286x4xf32> to vector<286x4xbf16>
    %c1_7 = arith.constant 1 : index
    %c0_8 = arith.constant 0 : index
    %c0_9 = arith.constant 0 : index
    %9 = vector.load %arg2[%c1_7, %c0_8, %c0_9] : memref<9x4x32xbf16, #tpu.memory_space<vmem>>, vector<1x4x32xbf16>
    %10 = vector.shape_cast %9 : vector<1x4x32xbf16> to vector<4x32xbf16>
    %cst_10 = arith.constant dense<0.000000e+00> : vector<286x32xf32>
    %11 = tpu.matmul %8, %10, %cst_10 {dimension_numbers = #tpu.dot_dimension_numbers<[1], [0], [0], [1], [0, 0, 1, 1], [], []>} : vector<286x4xbf16>, vector<4x32xbf16>, vector<286x32xf32> -> vector<286x32xf32>
    %12 = arith.addf %5, %11 : vector<286x32xf32>
    %c0_11 = arith.constant 0 : index
    %c2 = arith.constant 2 : index
    %c0_12 = arith.constant 0 : index
    %13 = vector.load %arg1[%c0_11, %c2, %c0_12] : memref<1x324x4xf32, #tpu.memory_space<vmem>>, vector<1x286x4xf32>
    %14 = vector.shape_cast %13 : vector<1x286x4xf32> to vector<286x4xf32>
    %15 = arith.truncf %14 : vector<286x4xf32> to vector<286x4xbf16>
    %c2_13 = arith.constant 2 : index
    %c0_14 = arith.constant 0 : index
    %c0_15 = arith.constant 0 : index
    %16 = vector.load %arg2[%c2_13, %c0_14, %c0_15] : memref<9x4x32xbf16, #tpu.memory_space<vmem>>, vector<1x4x32xbf16>
    %17 = vector.shape_cast %16 : vector<1x4x32xbf16> to vector<4x32xbf16>
    %cst_16 = arith.constant dense<0.000000e+00> : vector<286x32xf32>
    %18 = tpu.matmul %15, %17, %cst_16 {dimension_numbers = #tpu.dot_dimension_numbers<[1], [0], [0], [1], [0, 0, 1, 1], [], []>} : vector<286x4xbf16>, vector<4x32xbf16>, vector<286x32xf32> -> vector<286x32xf32>
    %19 = arith.addf %12, %18 : vector<286x32xf32>
    %c0_17 = arith.constant 0 : index
    %c18 = arith.constant 18 : index
    %c0_18 = arith.constant 0 : index
    %20 = vector.load %arg1[%c0_17, %c18, %c0_18] : memref<1x324x4xf32, #tpu.memory_space<vmem>>, vector<1x286x4xf32>
    %21 = vector.shape_cast %20 : vector<1x286x4xf32> to vector<286x4xf32>
    %22 = arith.truncf %21 : vector<286x4xf32> to vector<286x4xbf16>
    %c3 = arith.constant 3 : index
    %c0_19 = arith.constant 0 : index
    %c0_20 = arith.constant 0 : index
    %23 = vector.load %arg2[%c3, %c0_19, %c0_20] : memref<9x4x32xbf16, #tpu.memory_space<vmem>>, vector<1x4x32xbf16>
    %24 = vector.shape_cast %23 : vector<1x4x32xbf16> to vector<4x32xbf16>
    %cst_21 = arith.constant dense<0.000000e+00> : vector<286x32xf32>
    %25 = tpu.matmul %22, %24, %cst_21 {dimension_numbers = #tpu.dot_dimension_numbers<[1], [0], [0], [1], [0, 0, 1, 1], [], []>} : vector<286x4xbf16>, vector<4x32xbf16>, vector<286x32xf32> -> vector<286x32xf32>
    %26 = arith.addf %19, %25 : vector<286x32xf32>
    %c0_22 = arith.constant 0 : index
    %c19 = arith.constant 19 : index
    %c0_23 = arith.constant 0 : index
    %27 = vector.load %arg1[%c0_22, %c19, %c0_23] : memref<1x324x4xf32, #tpu.memory_space<vmem>>, vector<1x286x4xf32>
    %28 = vector.shape_cast %27 : vector<1x286x4xf32> to vector<286x4xf32>
    %29 = arith.truncf %28 : vector<286x4xf32> to vector<286x4xbf16>
    %c4 = arith.constant 4 : index
    %c0_24 = arith.constant 0 : index
    %c0_25 = arith.constant 0 : index
    %30 = vector.load %arg2[%c4, %c0_24, %c0_25] : memref<9x4x32xbf16, #tpu.memory_space<vmem>>, vector<1x4x32xbf16>
    %31 = vector.shape_cast %30 : vector<1x4x32xbf16> to vector<4x32xbf16>
    %cst_26 = arith.constant dense<0.000000e+00> : vector<286x32xf32>
    %32 = tpu.matmul %29, %31, %cst_26 {dimension_numbers = #tpu.dot_dimension_numbers<[1], [0], [0], [1], [0, 0, 1, 1], [], []>} : vector<286x4xbf16>, vector<4x32xbf16>, vector<286x32xf32> -> vector<286x32xf32>
    %33 = arith.addf %26, %32 : vector<286x32xf32>
    %c0_27 = arith.constant 0 : index
    %c20 = arith.constant 20 : index
    %c0_28 = arith.constant 0 : index
    %34 = vector.load %arg1[%c0_27, %c20, %c0_28] : memref<1x324x4xf32, #tpu.memory_space<vmem>>, vector<1x286x4xf32>
    %35 = vector.shape_cast %34 : vector<1x286x4xf32> to vector<286x4xf32>
    %36 = arith.truncf %35 : vector<286x4xf32> to vector<286x4xbf16>
    %c5 = arith.constant 5 : index
    %c0_29 = arith.constant 0 : index
    %c0_30 = arith.constant 0 : index
    %37 = vector.load %arg2[%c5, %c0_29, %c0_30] : memref<9x4x32xbf16, #tpu.memory_space<vmem>>, vector<1x4x32xbf16>
    %38 = vector.shape_cast %37 : vector<1x4x32xbf16> to vector<4x32xbf16>
    %cst_31 = arith.constant dense<0.000000e+00> : vector<286x32xf32>
    %39 = tpu.matmul %36, %38, %cst_31 {dimension_numbers = #tpu.dot_dimension_numbers<[1], [0], [0], [1], [0, 0, 1, 1], [], []>} : vector<286x4xbf16>, vector<4x32xbf16>, vector<286x32xf32> -> vector<286x32xf32>
    %40 = arith.addf %33, %39 : vector<286x32xf32>
    %c0_32 = arith.constant 0 : index
    %c36 = arith.constant 36 : index
    %c0_33 = arith.constant 0 : index
    %41 = vector.load %arg1[%c0_32, %c36, %c0_33] : memref<1x324x4xf32, #tpu.memory_space<vmem>>, vector<1x286x4xf32>
    %42 = vector.shape_cast %41 : vector<1x286x4xf32> to vector<286x4xf32>
    %43 = arith.truncf %42 : vector<286x4xf32> to vector<286x4xbf16>
    %c6 = arith.constant 6 : index
    %c0_34 = arith.constant 0 : index
    %c0_35 = arith.constant 0 : index
    %44 = vector.load %arg2[%c6, %c0_34, %c0_35] : memref<9x4x32xbf16, #tpu.memory_space<vmem>>, vector<1x4x32xbf16>
    %45 = vector.shape_cast %44 : vector<1x4x32xbf16> to vector<4x32xbf16>
    %cst_36 = arith.constant dense<0.000000e+00> : vector<286x32xf32>
    %46 = tpu.matmul %43, %45, %cst_36 {dimension_numbers = #tpu.dot_dimension_numbers<[1], [0], [0], [1], [0, 0, 1, 1], [], []>} : vector<286x4xbf16>, vector<4x32xbf16>, vector<286x32xf32> -> vector<286x32xf32>
    %47 = arith.addf %40, %46 : vector<286x32xf32>
    %c0_37 = arith.constant 0 : index
    %c37 = arith.constant 37 : index
    %c0_38 = arith.constant 0 : index
    %48 = vector.load %arg1[%c0_37, %c37, %c0_38] : memref<1x324x4xf32, #tpu.memory_space<vmem>>, vector<1x286x4xf32>
    %49 = vector.shape_cast %48 : vector<1x286x4xf32> to vector<286x4xf32>
    %50 = arith.truncf %49 : vector<286x4xf32> to vector<286x4xbf16>
    %c7 = arith.constant 7 : index
    %c0_39 = arith.constant 0 : index
    %c0_40 = arith.constant 0 : index
    %51 = vector.load %arg2[%c7, %c0_39, %c0_40] : memref<9x4x32xbf16, #tpu.memory_space<vmem>>, vector<1x4x32xbf16>
    %52 = vector.shape_cast %51 : vector<1x4x32xbf16> to vector<4x32xbf16>
    %cst_41 = arith.constant dense<0.000000e+00> : vector<286x32xf32>
    %53 = tpu.matmul %50, %52, %cst_41 {dimension_numbers = #tpu.dot_dimension_numbers<[1], [0], [0], [1], [0, 0, 1, 1], [], []>} : vector<286x4xbf16>, vector<4x32xbf16>, vector<286x32xf32> -> vector<286x32xf32>
    %54 = arith.addf %47, %53 : vector<286x32xf32>
    %c0_42 = arith.constant 0 : index
    %c38 = arith.constant 38 : index
    %c0_43 = arith.constant 0 : index
    %55 = vector.load %arg1[%c0_42, %c38, %c0_43] : memref<1x324x4xf32, #tpu.memory_space<vmem>>, vector<1x286x4xf32>
    %56 = vector.shape_cast %55 : vector<1x286x4xf32> to vector<286x4xf32>
    %57 = arith.truncf %56 : vector<286x4xf32> to vector<286x4xbf16>
    %c8 = arith.constant 8 : index
    %c0_44 = arith.constant 0 : index
    %c0_45 = arith.constant 0 : index
    %58 = vector.load %arg2[%c8, %c0_44, %c0_45] : memref<9x4x32xbf16, #tpu.memory_space<vmem>>, vector<1x4x32xbf16>
    %59 = vector.shape_cast %58 : vector<1x4x32xbf16> to vector<4x32xbf16>
    %cst_46 = arith.constant dense<0.000000e+00> : vector<286x32xf32>
    %60 = tpu.matmul %57, %59, %cst_46 {dimension_numbers = #tpu.dot_dimension_numbers<[1], [0], [0], [1], [0, 0, 1, 1], [], []>} : vector<286x4xbf16>, vector<4x32xbf16>, vector<286x32xf32> -> vector<286x32xf32>
    %61 = arith.addf %54, %60 : vector<286x32xf32>
    %c0_47 = arith.constant 0 : index
    %c0_48 = arith.constant 0 : index
    %62 = vector.load %arg3[%c0_47, %c0_48] : memref<1x32xf32, #tpu.memory_space<vmem>>, vector<1x32xf32>
    %63 = vector.broadcast %62 : vector<1x32xf32> to vector<286x32xf32>
    %64 = arith.addf %61, %63 : vector<286x32xf32>
    %cst_49 = arith.constant 0.000000e+00 : f32
    %65 = vector.broadcast %cst_49 : f32 to vector<286x32xf32>
    %66 = arith.maximumf %64, %65 : vector<286x32xf32>
    %c0_50 = arith.constant 0 : index
    %c0_51 = arith.constant 0 : index
    %67 = vector.load %arg4[%c0_50, %c0_51] : memref<286x1xf32, #tpu.memory_space<vmem>>, vector<286x1xf32>
    %68 = vector.broadcast %67 : vector<286x1xf32> to vector<286x32xf32>
    %69 = arith.mulf %66, %68 : vector<286x32xf32>
    %cst_52 = arith.constant dense<0.000000e+00> : vector<32xf32>
    %70 = vector.multi_reduction <add>, %69, %cst_52 [0] : vector<286x32xf32> to vector<32xf32>
    %71 = vector.shape_cast %70 : vector<32xf32> to vector<1x32xf32>
    %72 = arith.truncf %71 : vector<1x32xf32> to vector<1x32xbf16>
    %c0_53 = arith.constant 0 : index
    %c0_54 = arith.constant 0 : index
    %73 = vector.load %arg6[%c0_53, %c0_54] : memref<32x128xbf16, #tpu.memory_space<vmem>>, vector<32x128xbf16>
    %cst_55 = arith.constant dense<0.000000e+00> : vector<1x128xf32>
    %74 = tpu.matmul %72, %73, %cst_55 {dimension_numbers = #tpu.dot_dimension_numbers<[1], [0], [0], [1], [0, 0, 1, 1], [], []>} : vector<1x32xbf16>, vector<32x128xbf16>, vector<1x128xf32> -> vector<1x128xf32>
    %c0_56 = arith.constant 0 : index
    %c0_57 = arith.constant 0 : index
    %c0_58 = arith.constant 0 : index
    %75 = vector.load %arg5[%c0_56, %c0_57, %c0_58] : memref<1x1x2xf32, #tpu.memory_space<vmem>>, vector<1x1x2xf32>
    %76 = vector.shape_cast %75 : vector<1x1x2xf32> to vector<1x2xf32>
    %c0_59 = arith.constant 0 : index
    %c0_60 = arith.constant 0 : index
    %77 = vector.load %arg7[%c0_59, %c0_60] : memref<2x128xf32, #tpu.memory_space<vmem>>, vector<2x128xf32>
    %78 = vector.extract_strided_slice %76 {offsets = [0, 0], sizes = [1, 1], strides = [1, 1]} : vector<1x2xf32> to vector<1x1xf32>
    %79 = vector.extract_strided_slice %77 {offsets = [0, 0], sizes = [1, 128], strides = [1, 1]} : vector<2x128xf32> to vector<1x128xf32>
    %80 = vector.broadcast %78 : vector<1x1xf32> to vector<1x128xf32>
    %81 = arith.mulf %80, %79 : vector<1x128xf32>
    %82 = arith.addf %74, %81 : vector<1x128xf32>
    %83 = vector.extract_strided_slice %76 {offsets = [0, 1], sizes = [1, 1], strides = [1, 1]} : vector<1x2xf32> to vector<1x1xf32>
    %84 = vector.extract_strided_slice %77 {offsets = [1, 0], sizes = [1, 128], strides = [1, 1]} : vector<2x128xf32> to vector<1x128xf32>
    %85 = vector.broadcast %83 : vector<1x1xf32> to vector<1x128xf32>
    %86 = arith.mulf %85, %84 : vector<1x128xf32>
    %87 = arith.addf %82, %86 : vector<1x128xf32>
    %c0_61 = arith.constant 0 : index
    %c0_62 = arith.constant 0 : index
    %88 = vector.load %arg8[%c0_61, %c0_62] : memref<1x128xf32, #tpu.memory_space<vmem>>, vector<1x128xf32>
    %89 = arith.addf %87, %88 : vector<1x128xf32>
    %cst_63 = arith.constant 0.000000e+00 : f32
    %90 = vector.broadcast %cst_63 : f32 to vector<1x128xf32>
    %91 = arith.maximumf %89, %90 : vector<1x128xf32>
    %92 = arith.truncf %91 : vector<1x128xf32> to vector<1x128xbf16>
    %c0_64 = arith.constant 0 : index
    %c0_65 = arith.constant 0 : index
    %93 = vector.load %arg9[%c0_64, %c0_65] : memref<128x128xbf16, #tpu.memory_space<vmem>>, vector<128x128xbf16>
    %cst_66 = arith.constant dense<0.000000e+00> : vector<1x128xf32>
    %94 = tpu.matmul %92, %93, %cst_66 {dimension_numbers = #tpu.dot_dimension_numbers<[1], [0], [0], [1], [0, 0, 1, 1], [], []>} : vector<1x128xbf16>, vector<128x128xbf16>, vector<1x128xf32> -> vector<1x128xf32>
    %c0_67 = arith.constant 0 : index
    %c0_68 = arith.constant 0 : index
    %95 = vector.load %arg10[%c0_67, %c0_68] : memref<1x128xf32, #tpu.memory_space<vmem>>, vector<1x128xf32>
    %96 = arith.addf %94, %95 : vector<1x128xf32>
    %c0_69 = arith.constant 0 : index
    %c0_70 = arith.constant 0 : index
    %c0_71 = arith.constant 0 : index
    %97 = vector.load %arg11[%c0_69, %c0_70, %c0_71] : memref<1x1x128xf32, #tpu.memory_space<vmem>>, vector<1x1x128xf32>
    %98 = vector.shape_cast %97 : vector<1x1x128xf32> to vector<1x128xf32>
    %99 = vector.shape_cast %96 : vector<1x128xf32> to vector<1x1x128xf32>
    tpu.vector_store %arg11[%c0_69, %c0_70, %c0_71], %99 {strides = array<i32>} : memref<1x1x128xf32, #tpu.memory_space<vmem>>, vector<1x1x128xf32>,
    return
  }
  func.func @transform_0(%arg0: i32) -> (i32, i32, i32) {
    %c0_i32 = arith.constant 0 : i32
    %c0_i32_0 = arith.constant 0 : i32
    %c0_i32_1 = arith.constant 0 : i32
    return %arg0, %c0_i32, %c0_i32_0 : i32, i32, i32
  }
  func.func @transform_1(%arg0: i32) -> (i32, i32, i32) {
    %c0_i32 = arith.constant 0 : i32
    %c0_i32_0 = arith.constant 0 : i32
    %c0_i32_1 = arith.constant 0 : i32
    %c0_i32_2 = arith.constant 0 : i32
    return %c0_i32, %c0_i32_0, %c0_i32_1 : i32, i32, i32
  }
  func.func @transform_2(%arg0: i32) -> (i32, i32) {
    %c0_i32 = arith.constant 0 : i32
    %c0_i32_0 = arith.constant 0 : i32
    %c0_i32_1 = arith.constant 0 : i32
    return %c0_i32, %c0_i32_0 : i32, i32
  }
  func.func @transform_3(%arg0: i32) -> (i32, i32) {
    %c0_i32 = arith.constant 0 : i32
    %c0_i32_0 = arith.constant 0 : i32
    %c0_i32_1 = arith.constant 0 : i32
    return %c0_i32, %c0_i32_0 : i32, i32
  }
  func.func @transform_4(%arg0: i32) -> (i32, i32, i32) {
    %c0_i32 = arith.constant 0 : i32
    %c0_i32_0 = arith.constant 0 : i32
    %c0_i32_1 = arith.constant 0 : i32
    return %arg0, %c0_i32, %c0_i32_0 : i32, i32, i32
  }
  func.func @transform_5(%arg0: i32) -> (i32, i32) {
    %c0_i32 = arith.constant 0 : i32
    %c0_i32_0 = arith.constant 0 : i32
    %c0_i32_1 = arith.constant 0 : i32
    return %c0_i32, %c0_i32_0 : i32, i32
  }
  func.func @transform_6(%arg0: i32) -> (i32, i32) {
    %c0_i32 = arith.constant 0 : i32
    %c0_i32_0 = arith.constant 0 : i32
    %c0_i32_1 = arith.constant 0 : i32
    return %c0_i32, %c0_i32_0 : i32, i32
  }
  func.func @transform_7(%arg0: i32) -> (i32, i32) {
    %c0_i32 = arith.constant 0 : i32
    %c0_i32_0 = arith.constant 0 : i32
    %c0_i32_1 = arith.constant 0 : i32
    return %c0_i32, %c0_i32_0 : i32, i32
  }
  func.func @transform_8(%arg0: i32) -> (i32, i32) {
    %c0_i32 = arith.constant 0 : i32
    %c0_i32_0 = arith.constant 0 : i32
    %c0_i32_1 = arith.constant 0 : i32
    return %c0_i32, %c0_i32_0 : i32, i32
  }
  func.func @transform_9(%arg0: i32) -> (i32, i32) {
    %c0_i32 = arith.constant 0 : i32
    %c0_i32_0 = arith.constant 0 : i32
    %c0_i32_1 = arith.constant 0 : i32
    return %c0_i32, %c0_i32_0 : i32, i32
  }
  func.func @transform_10(%arg0: i32) -> (i32, i32, i32) {
    %c0_i32 = arith.constant 0 : i32
    %c0_i32_0 = arith.constant 0 : i32
    %c0_i32_1 = arith.constant 0 : i32
    return %arg0, %c0_i32, %c0_i32_0 : i32, i32, i32
  }
}

</mosaic_0001>

<bundles_post_ra>
// kernel: concat_model_forward.1
= control target key start
LH: loop header
LB: loop body
LE: loop exit
PB: predicated region body
PF: predicated region fallthrough
CT: control target
= control target key end

     0   :  { %15 = vsyncpa [#allocation3], 0  ;;  %s6612_s0 = inlined_call_operand.vmem [shape: f32[2,324,4], index: 0, kind: input, shape index: {}]   ;;  %s6613_s1 = inlined_call_operand.vmem [shape: bf16[9,4,32], index: 1, kind: input, shape index: {}]   ;;  %s6614_s2 = inlined_call_operand.vmem [shape: f32[1,32], index: 2, kind: input, shape index: {}]   ;;  %s6615_s3 = inlined_call_operand.vmem [shape: f32[286,1], index: 3, kind: input, shape index: {}]   ;;  %s6616_s4 = inlined_call_operand.vmem [shape: f32[2,1,2], index: 4, kind: input, shape index: {}]   ;;  %s6617_s5 = inlined_call_operand.vmem [shape: bf16[32,128], index: 5, kind: input, shape index: {}]   ;;  %s6618_s6 = inlined_call_operand.vmem [shape: f32[2,128], index: 6, kind: input, shape index: {}]   ;;  %s6619_s7 = inlined_call_operand.vmem [shape: f32[1,128], index: 7, kind: input, shape index: {}]   ;;  %s6620_s8 = inlined_call_operand.vmem [shape: bf16[128,128], index: 8, kind: input, shape index: {}]   ;;  %s6621_s9 = inlined_call_operand.vmem [shape: f32[1,128], index: 9, kind: input, shape index: {}]   ;;  %s6622_s10 = inlined_call_operand.hbm [shape: f32[2,1,128], index: 10, kind: output, shape index: {}]  }
   0x1   :  { %17 = vsyncpa [#allocation3 + $0x1], 0  ;;  %s4853_s13 = smov 0   ;;  %s4855_s14 = smov 0  }
   0x2   :  { %s4857_s15 = smov 0   ;;  %s4859_s16 = smov 0  }
   0x3 LB: > { %s4874_s17 = sadd.s32 4294967295, %s4791_s16   ;;  %s3917_s18 = sadd.s32 4294967294, %s4791_s16   ;;  %s4791_s16 = sphi %s4859_s16, %s6663_s16   ;;  %s4787_s15 = sphi %s4857_s15, %s6662_s15   ;;  %s4783_s14 = sphi %s4855_s14, %s6661_s14   ;;  %s4779_s13 = sphi %s4853_s13, %s6660_s13  }
   0x4   : > { %s4878_s19 = sadd.s32 1, %s4791_s16   ;;  %s250_s20 = sadd.s32 1, %s4787_s15 }
   0x5   : > { %s247_s21 = ssub.s32 %s4791_s16, %s4878_s19  ;;  %p260_p0 = scmp.ne.s32.totalorder %s4787_s15, %s4783_s14 }
   0x6   : > { %p248_p1 = scmp.eq.s32.totalorder %s247_s21, 0  ;;  %p261_p2 = scmp.eq.s32.totalorder %s4874_s17, 1 }
   0x7   : > { %p266_p3 = scmp.ne.s32.totalorder %s4783_s14, %s4779_s13  ;;  %p267_p4 = scmp.eq.s32.totalorder %s3917_s18, 1 }
   0x8   : > { %s4889_s22 = scalar_select %p248_p1, %s4787_s15, %s250_s20  }
   0x9   : > { %p4891_p5 = por %p261_p2, %p260_p0  ;;  %p4895_p6 = por %p267_p4, %p266_p3 }
   0xa   : > { %p3920_p7 = scmp.ge.s32.totalorder %s4791_s16, 1  ;;  %p323_p8 = scmp.lt.s32.totalorder %s4791_s16, 3 }
   0xc   : > { %p324_p9 = pnand %p3920_p7, %p323_p8 }
   0xe   : > { %327 = sbr.rel (%p324_p9) target bundleno = 1006 (0x3ee), region = 60 }
  0x13   : > { %v3922_v0 = vld [vmem:[%s6613_s1 + $0x2] sm:$0x3]  ;;  %vm538_vm0 = vcmask 1041408   ;;  %p363_p10 = scmp.lt.s32.totalorder %s4874_s17, 1  ;;  %v3959_v2 = vld [vmem:[%s6613_s1 + $0x4] sm:$0x3] }
  0x14   : > { %4662 = vmatprep.subr.msk.bf16.mxu0 %vm538_vm0, %v3922_v0  ;;  %4663 = vmatprep.subr.msk.bf16.mxu1 %vm538_vm0, %v3922_v0  ;;  %v540_v1 = vsel %vm538_vm0, %v3922_v0, 0  ;;  %v426_v3 = vld [vmem:[%s6613_s1] sm:$0x3]  ;;  %vm483_vm1 = vcmask 31744   ;;  %v1064_v15 = vsel %vm538_vm0, %v3959_v2, 0  ;;  %vm4795_vm2 = vmmov 0  }
  0x15   : > { %4291 = vmatpush3.bf16.msra.mxu0 %v540_v1  ;;  %4661 = vmatpush3.bf16.msra.mxu1 %v540_v1  ;;  %s4915_s11 = scalar_select %p363_p10, %s4874_s17, 1  ;;  %v774_v23 = vsel %vm538_vm0, %v426_v3, 0  ;;  %v3978_v24 = vld [vmem:[%s6613_s1 + $0x6] sm:$0x3]  ;;  %v4948_v25 = vld [vmem:[%s6613_s1 + $0x8] sm:$0x3] }
  0x16   : > { %4665 = vmatprep.subr.msk.bf16.mxu0 %vm538_vm0, %v3959_v2  ;;  %4664 = vmatprep.subr.msk.bf16.mxu1 %vm538_vm0, %v426_v3  ;;  %v1390_v50 = vsel %vm538_vm0, %v3978_v24, 0  ;;  %v4981_v51 = vld [vmem:[%s6613_s1 + $0xa] sm:$0x3]  ;;  %vm3566_vm3 = vcmask 261120   ;;  %vm3636_vm4 = vcmask 259072   ;;  %s361_s20 = sand.u32 1, %s4783_s14  }
  0x17   : > { %s4672_s12 = smul.u32 328, %s4915_s11  ;;  %s5484_s26 = scalar_lea.vmem %s6616_s4, %s4915_s11 }
  0x18   : > { %s4104_s27 = sshll.u32 %s4874_s17, 4  ;;  %s362_s28 = scalar_lea.vmem [#allocation2], %s361_s20 }
  0x19   : > { %s4923_s21 = scalar_lea.vmem %s6612_s0, %s4672_s12  ;;  %s3853_s11 = sshll.u32 %s362_s28, 4  ;;  %s6573_s11 = int_to_ptr.vmem [resolvable:$true] %s3853_s11 }
  0x1a   : > { %v427_v4 = vld [vmem:[%s4923_s21 + $0x1] sm:$0xff]  ;;  %v428_v5 = vld [vmem:[%s4923_s21 + $0x9] sm:$0xff]  ;;  %v429_v9 = vld [vmem:[%s4923_s21 + $0x11] sm:$0xff]  ;;  %s6571_s30 = scalar_lea.hbm %s6622_s10, %s4104_s27  ;;  %s3841_s12 = scalar_lea.sflag [#allocation3], %s361_s20 }
  0x1b   : > { %v455_v6 = vld [vmem:[%s4923_s21 + $0xe1] sm:$0xff]  ;;  %v463_v7 = vpack.c.bf16 %v428_v5, %v427_v4  ;;  %v456_v8 = vld [vmem:[%s4923_s21 + $0xe9] sm:$0xff]  ;;  %v430_v10 = vld [vmem:[%s4923_s21 + $0x19] sm:$0xff]  ;;  %s4731_s18 = scalar_lea.vmem %s6573_s11, 16  ;;  %s4797_s17 = smov [#allocation2]  }
  0x1c   : > { %v477_v11 = vpack.c.bf16 %v456_v8, %v455_v6  ;;  %v464_v12 = vpack.c.bf16 %v430_v10, %v429_v9  ;;  %v457_v13 = vld [vmem:[%s4923_s21 + $0xf1] sm:$0xff]  ;;  %v458_v14 = vld [vmem:[%s4923_s21 + $0xf9] sm:$0xff]  ;;  %v431_v16 = vld [vmem:[%s4923_s21 + $0x21] sm:$0xff]  ;;  %p4732_p11 = scmp.ne.s32.totalorder %s6573_s11, %s4731_s18  ;;  %s4735_s25 = sshll.u32 %s4797_s17, 4  ;;  %s4736_s25 = int_to_ptr.vmem [resolvable:$false] %s4735_s25 }
  0x1d   : > { %4292 = vmatprep.mubr.msk.bf16.mxu0 %vm483_vm1, %v463_v7  ;;  %v478_v17 = vpack.c.bf16 %v458_v14, %v457_v13  ;;  %v432_v18 = vld [vmem:[%s4923_s21 + $0x29] sm:$0xff]  ;;  %v459_v19 = vld [vmem:[%s4923_s21 + $0x101] sm:$0xff]  ;;  %v433_v26 = vld [vmem:[%s4923_s21 + $0x31] sm:$0xff]  ;;  %p4738_p0 = scmp.lt.s32.totalorder %s6573_s11, %s4736_s25 }
  0x1e   : > { %v460_v20 = vld [vmem:[%s4923_s21 + $0x109] sm:$0xff]  ;;  %4320 = vmatprep.mubr.msk.bf16.mxu1 %vm483_vm1, %v477_v11  ;;  %4293 = vmatmul.mubr.msk.bf16.vlgmr.msra.gmra.mxu0 %vm483_vm1, %v464_v12  ;;  %v465_v21 = vpack.c.bf16 %v432_v18, %v431_v16  ;;  %v434_v27 = vld [vmem:[%s4923_s21 + $0x39] sm:$0xff]  ;;  %v461_v28 = vld [vmem:[%s4923_s21 + $0x111] sm:$0xff]  ;;  %p4733_p12 = pnand %p4732_p11, %p4891_p5 }
  0x1f   : > { %v479_v22 = vpack.c.bf16 %v460_v20, %v459_v19  ;;  %4321 = vmatmul.mubr.msk.bf16.vlgmr.msra.gmra.mxu1 %vm483_vm1, %v478_v17  ;;  %4367 = vmatpush3.bf16.msra.mxu0 %v1064_v15  ;;  %v462_v29 = vld [vmem:[%s4923_s21 + $0x119] sm:$0x3f]  ;;  %v435_v30 = vld [vmem:[%s4923_s21 + $0x41] sm:$0xff]  ;;  %v436_v31 = vld [vmem:[%s4923_s21 + $0x49] sm:$0xff]  ;;  %v466_v34 = vpack.c.bf16 %v434_v27, %v433_v26 }
  0x20   : > { %4296 = vmatprep.mubr.msk.bf16.mxu0 %vm483_vm1, %v465_v21  ;;  %4329 = vmatpush3.bf16.msra.mxu1 %v774_v23  ;;  %v372_v32 = vld [vmem:[%s4923_s21] sm:$0xff]  ;;  %v373_v33 = vld [vmem:[%s4923_s21 + $0x8] sm:$0xff]  ;;  %v480_v35 = vpack.c.bf16 %v462_v29, %v461_v28  ;;  %v467_v36 = vpack.c.bf16 %v436_v31, %v435_v30  ;;  %v437_v38 = vld [vmem:[%s4923_s21 + $0x51] sm:$0xff]  ;;  %p4734_p13 = pneg %p4733_p12 }
  0x21   : > { %4324 = vmatprep.mubr.msk.bf16.mxu1 %vm483_vm1, %v479_v22  ;;  %4667 = vmatprep.subr.msk.bf16.mxu0 %vm538_vm0, %v4948_v25  ;;  %v408_v37 = vpack.c.bf16 %v373_v33, %v372_v32  ;;  %v438_v39 = vld [vmem:[%s4923_s21 + $0x59] sm:$0xff]  ;;  %v374_v40 = vld [vmem:[%s4923_s21 + $0x10] sm:$0xff]  ;;  %v439_v42 = vld [vmem:[%s4923_s21 + $0x61] sm:$0xff] }
  0x22   : > { %4666 = vmatprep.subr.msk.bf16.mxu1 %vm538_vm0, %v3978_v24  ;;  %v375_v41 = vld [vmem:[%s4923_s21 + $0x18] sm:$0xff]  ;;  %v440_v43 = vld [vmem:[%s4923_s21 + $0x69] sm:$0xff]  ;;  %v376_v44 = vld [vmem:[%s4923_s21 + $0x20] sm:$0xff]  ;;  %v468_v46 = vpack.c.bf16 %v438_v39, %v437_v38 }
  0x23   : > { %v377_v45 = vld [vmem:[%s4923_s21 + $0x28] sm:$0xff]  ;;  %v409_v47 = vpack.c.bf16 %v375_v41, %v374_v40  ;;  %v469_v48 = vpack.c.bf16 %v440_v43, %v439_v42  ;;  %v441_v52 = vld [vmem:[%s4923_s21 + $0x71] sm:$0xff]  ;;  %v442_v53 = vld [vmem:[%s4923_s21 + $0x79] sm:$0xff] }
  0x24   : > { %v410_v49 = vpack.c.bf16 %v377_v45, %v376_v44  ;;  %v378_v54 = vld [vmem:[%s4923_s21 + $0x30] sm:$0xff]  ;;  %v379_v55 = vld [vmem:[%s4923_s21 + $0x38] sm:$0xff]  ;;  %v443_v56 = vld [vmem:[%s4923_s21 + $0x81] sm:$0xff]  ;;  %v470_v60 = vpack.c.bf16 %v442_v53, %v441_v52 }
  0x25   : > { %v444_v57 = vld [vmem:[%s4923_s21 + $0x89] sm:$0xff]  ;;  %v380_v58 = vld [vmem:[%s4923_s21 + $0x40] sm:$0xff]  ;;  %v411_v61 = vpack.c.bf16 %v379_v55, %v378_v54  ;;  %v445_v0 = vld [vmem:[%s4923_s21 + $0x91] sm:$0xff] }
  0x26   : > { %4297 = vmatmul.mubr.msk.bf16.gmra.mxu0 %vm483_vm1, %v466_v34  ;;  %v381_v59 = vld [vmem:[%s4923_s21 + $0x48] sm:$0xff]  ;;  %v471_v62 = vpack.c.bf16 %v444_v57, %v443_v56  ;;  %v446_v1 = vld [vmem:[%s4923_s21 + $0x99] sm:$0xff]  ;;  %v382_v2 = vld [vmem:[%s4923_s21 + $0x50] sm:$0xff] }
  0x27   : > { %4325 = vmatmul.mubr.msk.bf16.gmra.mxu1 %vm483_vm1, %v480_v35  ;;  %4300 = vmatprep.mubr.msk.bf16.mxu0 %vm483_vm1, %v467_v36  ;;  %v412_v63 = vpack.c.bf16 %v381_v59, %v380_v58  ;;  %v383_v3 = vld [vmem:[%s4923_s21 + $0x58] sm:$0xff]  ;;  %v447_v4 = vld [vmem:[%s4923_s21 + $0xa1] sm:$0xff]  ;;  %v448_v5 = vld [vmem:[%s4923_s21 + $0xa9] sm:$0xff]  ;;  %v472_v8 = vpack.c.bf16 %v446_v1, %v445_v0 }
  0x28   : > { %4330 = vmatprep.mubr.msk.bf16.mxu1 %vm483_vm1, %v408_v37  ;;  %v384_v6 = vld [vmem:[%s4923_s21 + $0x60] sm:$0xff]  ;;  %v385_v7 = vld [vmem:[%s4923_s21 + $0x68] sm:$0xff]  ;;  %v413_v9 = vpack.c.bf16 %v383_v3, %v382_v2  ;;  %v473_v10 = vpack.c.bf16 %v448_v5, %v447_v4  ;;  %v449_v12 = vld [vmem:[%s4923_s21 + $0xb1] sm:$0xff] }
  0x29   : > { %v414_v11 = vpack.c.bf16 %v385_v7, %v384_v6  ;;  %v450_v13 = vld [vmem:[%s4923_s21 + $0xb9] sm:$0xff]  ;;  %v386_v14 = vld [vmem:[%s4923_s21 + $0x70] sm:$0xff]  ;;  %v451_v16 = vld [vmem:[%s4923_s21 + $0xc1] sm:$0xff] }
  0x2a   : > { %v387_v15 = vld [vmem:[%s4923_s21 + $0x78] sm:$0xff]  ;;  %v452_v17 = vld [vmem:[%s4923_s21 + $0xc9] sm:$0xff]  ;;  %v388_v18 = vld [vmem:[%s4923_s21 + $0x80] sm:$0xff]  ;;  %v474_v20 = vpack.c.bf16 %v450_v13, %v449_v12 }
  0x2b   : > { %v389_v19 = vld [vmem:[%s4923_s21 + $0x88] sm:$0xff]  ;;  %v415_v21 = vpack.c.bf16 %v387_v15, %v386_v14  ;;  %v475_v22 = vpack.c.bf16 %v452_v17, %v451_v16  ;;  %v453_v24 = vld [vmem:[%s4923_s21 + $0xd1] sm:$0xff]  ;;  %v454_v26 = vld [vmem:[%s4923_s21 + $0xd9] sm:$0xff] }
  0x2c   : > { %v416_v23 = vpack.c.bf16 %v389_v19, %v388_v18  ;;  %v390_v27 = vld [vmem:[%s4923_s21 + $0x90] sm:$0xff]  ;;  %v391_v28 = vld [vmem:[%s4923_s21 + $0x98] sm:$0xff]  ;;  %v953_v29 = vld [vmem:[%s4923_s21 + $0x2] sm:$0xff]  ;;  %v476_v33 = vpack.c.bf16 %v454_v26, %v453_v24 }
  0x2d   : > { %v954_v30 = vld [vmem:[%s4923_s21 + $0xa] sm:$0xff]  ;;  %v392_v31 = vld [vmem:[%s4923_s21 + $0xa0] sm:$0xff]  ;;  %v417_v34 = vpack.c.bf16 %v391_v28, %v390_v27  ;;  %v395_v38 = vld [vmem:[%s4923_s21 + $0xb8] sm:$0xff]  ;;  %v2042_v27 = vsel %vm538_vm0, %v4981_v51, 0 }
  0x2e   : > { %4301 = vmatmul.mubr.msk.bf16.gmra.mxu0 %vm483_vm1, %v468_v46  ;;  %v393_v32 = vld [vmem:[%s4923_s21 + $0xa8] sm:$0xff]  ;;  %v989_v35 = vpack.c.bf16 %v954_v30, %v953_v29  ;;  %v394_v37 = vld [vmem:[%s4923_s21 + $0xb0] sm:$0xff]  ;;  %v956_v40 = vld [vmem:[%s4923_s21 + $0x1a] sm:$0xff] }
  0x2f   : > { %4331 = vmatmul.mubr.msk.bf16.vlgmr.msra.gmra.mxu1 %vm483_vm1, %v409_v47  ;;  %4304 = vmatprep.mubr.msk.bf16.mxu0 %vm483_vm1, %v469_v48  ;;  %v418_v36 = vpack.c.bf16 %v393_v32, %v392_v31  ;;  %v955_v39 = vld [vmem:[%s4923_s21 + $0x12] sm:$0xff]  ;;  %v396_v41 = vld [vmem:[%s4923_s21 + $0xc0] sm:$0xff]  ;;  %v397_v42 = vld [vmem:[%s4923_s21 + $0xc8] sm:$0xff]  ;;  %v419_v46 = vpack.c.bf16 %v395_v38, %v394_v37  ;;  %v1716_v47 = vsel %vm538_vm0, %v4948_v25, 0 }
  0x30   : > { %4334 = vmatprep.mubr.msk.bf16.mxu1 %vm483_vm1, %v410_v49  ;;  %4405 = vmatpush3.bf16.msra.mxu1 %v1390_v50  ;;  %v957_v43 = vld [vmem:[%s4923_s21 + $0x22] sm:$0xff]  ;;  %v958_v44 = vld [vmem:[%s4923_s21 + $0x2a] sm:$0xff]  ;;  %v990_v45 = vpack.c.bf16 %v956_v40, %v955_v39  ;;  %v420_v48 = vpack.c.bf16 %v397_v42, %v396_v41  ;;  %v959_v53 = vld [vmem:[%s4923_s21 + $0x32] sm:$0xff] }
  0x31   : > { %4668 = vmatprep.subr.msk.bf16.mxu1 %vm538_vm0, %v4981_v51  ;;  %v991_v49 = vpack.c.bf16 %v958_v44, %v957_v43  ;;  %v5050_v50 = vld [vmem:[%s6613_s1 + $0xc] sm:$0x3]  ;;  %v398_v52 = vld [vmem:[%s4923_s21 + $0xd0] sm:$0xff]  ;;  %v960_v54 = vld [vmem:[%s4923_s21 + $0x3a] sm:$0xff] }
  0x32   : > { %v399_v25 = vld [vmem:[%s4923_s21 + $0xd8] sm:$0xff]  ;;  %v961_v55 = vld [vmem:[%s4923_s21 + $0x42] sm:$0xff]  ;;  %v962_v56 = vld [vmem:[%s4923_s21 + $0x4a] sm:$0xff]  ;;  %v992_v59 = vpack.c.bf16 %v960_v54, %v959_v53 }
  0x33   : > { %v400_v57 = vld [vmem:[%s4923_s21 + $0xe0] sm:$0xff]  ;;  %v401_v58 = vld [vmem:[%s4923_s21 + $0xe8] sm:$0xff]  ;;  %v963_v0 = vld [vmem:[%s4923_s21 + $0x52] sm:$0xff] }
  0x34   : > { %v964_v1 = vld [vmem:[%s4923_s21 + $0x5a] sm:$0xff]  ;;  %v965_v3 = vld [vmem:[%s4923_s21 + $0x62] sm:$0xff]  ;;  %v966_v4 = vld [vmem:[%s4923_s21 + $0x6a] sm:$0xff] }
  0x35   : > { %v403_v2 = vld [vmem:[%s4923_s21 + $0xf8] sm:$0xff]  ;;  %v404_v5 = vld [vmem:[%s4923_s21 + $0x100] sm:$0xff]  ;;  %v405_v6 = vld [vmem:[%s4923_s21 + $0x108] sm:$0xff]  ;;  %v994_v7 = vpack.c.bf16 %v964_v1, %v963_v0 }
  0x36   : > { %4305 = vmatmul.mubr.msk.bf16.gmra.mxu0 %vm483_vm1, %v470_v60  ;;  %v421_v60 = vpack.c.bf16 %v399_v25, %v398_v52  ;;  %v967_v12 = vld [vmem:[%s4923_s21 + $0x72] sm:$0xff]  ;;  %v968_v13 = vld [vmem:[%s4923_s21 + $0x7a] sm:$0xff]  ;;  %v969_v15 = vld [vmem:[%s4923_s21 + $0x82] sm:$0xff] }
  0x37   : > { %4335 = vmatmul.mubr.msk.bf16.gmra.mxu1 %vm483_vm1, %v411_v61  ;;  %4308 = vmatprep.mubr.msk.bf16.mxu0 %vm483_vm1, %v471_v62  ;;  %v993_v61 = vpack.c.bf16 %v962_v56, %v961_v55  ;;  %v422_v62 = vpack.c.bf16 %v401_v58, %v400_v57  ;;  %v407_v14 = vld [vmem:[%s4923_s21 + $0x118] sm:$0x3f]  ;;  %v970_v16 = vld [vmem:[%s4923_s21 + $0x8a] sm:$0xff]  ;;  %v996_v17 = vpack.c.bf16 %v968_v13, %v967_v12  ;;  %v977_v51 = vld [vmem:[%s4923_s21 + $0xc2] sm:$0xff]  ;;  %v2368_v58 = vsel %vm538_vm0, %v5050_v50, 0 }
  0x38   : > { %4338 = vmatprep.mubr.msk.bf16.mxu1 %vm483_vm1, %v412_v63  ;;  %v402_v63 = vld [vmem:[%s4923_s21 + $0xf0] sm:$0xff]  ;;  %v997_v19 = vpack.c.bf16 %v970_v16, %v969_v15  ;;  %v5101_v28 = vld [vmem:[%s6613_s1 + $0xe] sm:$0x3]  ;;  %v976_v30 = vld [vmem:[%s4923_s21 + $0xba] sm:$0xff] }
  0x39   : > { %v975_v29 = vld [vmem:[%s4923_s21 + $0xb2] sm:$0xff]  ;;  %v978_v31 = vld [vmem:[%s4923_s21 + $0xca] sm:$0xff]  ;;  %v984_v41 = vld [vmem:[%s4923_s21 + $0xfa] sm:$0xff] }
  0x3a   : > { %v1000_v32 = vpack.c.bf16 %v976_v30, %v975_v29  ;;  %v982_v37 = vld [vmem:[%s4923_s21 + $0xea] sm:$0xff]  ;;  %v983_v40 = vld [vmem:[%s4923_s21 + $0xf2] sm:$0xff]  ;;  %v985_v42 = vld [vmem:[%s4923_s21 + $0x102] sm:$0xff] }
  0x3b   : > { %v986_v43 = vld [vmem:[%s4923_s21 + $0x10a] sm:$0xff]  ;;  %v1004_v44 = vpack.c.bf16 %v984_v41, %v983_v40  ;;  %v1609_v55 = vld [vmem:[%s4923_s21 + $0x33] sm:$0xff]  ;;  %v1610_v56 = vld [vmem:[%s4923_s21 + $0x3b] sm:$0xff]  ;;  %v2694_v40 = vsel %vm538_vm0, %v5101_v28, 0 }
  0x3c   : > { %v1607_v54 = vld [vmem:[%s4923_s21 + $0x23] sm:$0xff]  ;;  %v1608_v25 = vld [vmem:[%s4923_s21 + $0x2b] sm:$0xff]  ;;  %v1622_v15 = vld [vmem:[%s4923_s21 + $0x9b] sm:$0xff] }
  0x3d   : > { %v1642_v57 = vpack.c.bf16 %v1608_v25, %v1607_v54  ;;  %v1620_v12 = vld [vmem:[%s4923_s21 + $0x8b] sm:$0xff]  ;;  %v1931_v16 = vld [vmem:[%s4923_s21 + $0x14] sm:$0xff]  ;;  %v1627_v41 = vld [vmem:[%s4923_s21 + $0xc3] sm:$0xff] }
  0x3e   : > { %4309 = vmatmul.mubr.msk.bf16.gmra.mxu0 %vm483_vm1, %v472_v8  ;;  %v423_v8 = vpack.c.bf16 %v403_v2, %v402_v63  ;;  %v1614_v63 = vld [vmem:[%s4923_s21 + $0x5b] sm:$0xff]  ;;  %v1615_v2 = vld [vmem:[%s4923_s21 + $0x63] sm:$0xff]  ;;  %v1934_v30 = vld [vmem:[%s4923_s21 + $0x2c] sm:$0xff] }
  0x3f   : > { %4339 = vmatmul.mubr.msk.bf16.gmra.mxu1 %vm483_vm1, %v413_v9  ;;  %4312 = vmatprep.mubr.msk.bf16.mxu0 %vm483_vm1, %v473_v10  ;;  %v995_v9 = vpack.c.bf16 %v966_v4, %v965_v3  ;;  %v424_v10 = vpack.c.bf16 %v405_v6, %v404_v5  ;;  %v1616_v3 = vld [vmem:[%s4923_s21 + $0x6b] sm:$0xff]  ;;  %v1617_v4 = vld [vmem:[%s4923_s21 + $0x73] sm:$0xff]  ;;  %v1618_v5 = vld [vmem:[%s4923_s21 + $0x7b] sm:$0xff] }
  0x40   : > { %4342 = vmatprep.mubr.msk.bf16.mxu1 %vm483_vm1, %v414_v11  ;;  %v406_v11 = vld [vmem:[%s4923_s21 + $0x110] sm:$0xff]  ;;  %v1312_v6 = vld [vmem:[%s4923_s21 + $0x11a] sm:$0xff]  ;;  %v1314_v13 = vld [vmem:[%s4923_s21 + $0x12a] sm:$0x3f] }
  0x41   : > { %v425_v18 = vpack.c.bf16 %v407_v14, %v406_v11  ;;  %v1619_v11 = vld [vmem:[%s4923_s21 + $0x83] sm:$0xff]  ;;  %v1621_v14 = vld [vmem:[%s4923_s21 + $0x93] sm:$0xff] }
  0x42   : > { %v3315_v29 = vld [vmem:[%s6615_s3 + $0x8] sm:$0xff] }
  0x43   : > { %v3319_v25 = vld [vmem:[%s6615_s3 + $0x28] sm:$0xff] }
  0x46   : > { %4313 = vmatmul.mubr.msk.bf16.gmra.mxu0 %vm483_vm1, %v474_v20  ;;  %v971_v20 = vld [vmem:[%s4923_s21 + $0x92] sm:$0xff] }
  0x47   : > { %4343 = vmatmul.mubr.msk.bf16.gmra.mxu1 %vm483_vm1, %v415_v21  ;;  %4316 = vmatprep.mubr.msk.bf16.mxu0 %vm483_vm1, %v475_v22  ;;  %v972_v21 = vld [vmem:[%s4923_s21 + $0x9a] sm:$0xff]  ;;  %v973_v22 = vld [vmem:[%s4923_s21 + $0xa2] sm:$0xff] }
  0x48   : > { %4346 = vmatprep.mubr.msk.bf16.mxu1 %vm483_vm1, %v416_v23  ;;  %v974_v23 = vld [vmem:[%s4923_s21 + $0xaa] sm:$0xff]  ;;  %v998_v24 = vpack.c.bf16 %v972_v21, %v971_v20  ;;  %v1649_v20 = vpack.c.bf16 %v1622_v15, %v1621_v14  ;;  %v4793_v21 = vmov 0   ;;  %v1637_v15 = vld [vmem:[%s4923_s21 + $0x113] sm:$0xff] }
  0x49   : > { %v999_v26 = vpack.c.bf16 %v974_v23, %v973_v22  ;;  %4716 = vset.pattern.permute.xlu0 %v4793_v21  ;;  %v3314_v22 = vld [vmem:[%s6615_s3] sm:$0xff]  ;;  %4717 = vset.pattern.permute.xlu1 %v4793_v21  ;;  %v1946_v14 = vld [vmem:[%s4923_s21 + $0x8c] sm:$0xff] }
  0x4a   : > { %3352 = vperm.xlu0 %4716, %v3314_v22   ;;  %v3327_v22 = vld [vmem:[%s6615_s3 + $0x68] sm:$0xff] }
  0x4e   : > { %4317 = vmatmul.mubr.msk.bf16.gmra.mxu0 %vm483_vm1, %v476_v33  ;;  %v1001_v33 = vpack.c.bf16 %v978_v31, %v977_v51  ;;  %v1625_v51 = vld [vmem:[%s4923_s21 + $0xb3] sm:$0xff]  ;;  %v1626_v31 = vld [vmem:[%s4923_s21 + $0xbb] sm:$0xff]  ;;  %3357 = vperm.xlu0 %4716, %v3315_v29  }
  0x4f   : > { %4347 = vmatmul.mubr.msk.bf16.gmra.mxu1 %vm483_vm1, %v417_v34  ;;  %4368 = vmatprep.mubr.msk.bf16.mxu0 %vm483_vm1, %v989_v35  ;;  %v979_v34 = vld [vmem:[%s4923_s21 + $0xd2] sm:$0xff]  ;;  %v980_v35 = vld [vmem:[%s4923_s21 + $0xda] sm:$0xff] }
  0x50   : > { %4350 = vmatprep.mubr.msk.bf16.mxu1 %vm483_vm1, %v418_v36  ;;  %v981_v36 = vld [vmem:[%s4923_s21 + $0xe2] sm:$0xff]  ;;  %v1002_v38 = vpack.c.bf16 %v980_v35, %v979_v34  ;;  %v3329_v29 = vld [vmem:[%s6615_s3 + $0x78] sm:$0xff] }
  0x51   : > { %v1003_v39 = vpack.c.bf16 %v982_v37, %v981_v36  ;;  %v1651_v36 = vpack.c.bf16 %v1626_v31, %v1625_v51  ;;  %v3316_v37 = vld [vmem:[%s6615_s3 + $0x10] sm:$0xff]  ;;  %v1949_v51 = vld [vmem:[%s4923_s21 + $0xa4] sm:$0xff] }
  0x52   : > { %3362 = vperm.xlu1 %4717, %v3316_v37   ;;  %v1950_v31 = vld [vmem:[%s4923_s21 + $0xac] sm:$0xff] }
  0x53   : > { %v3331_v37 = vld [vmem:[%s6615_s3 + $0x88] sm:$0xff] }
  0x56   : > { %4369 = vmatmul.mubr.msk.bf16.vlgmr.msra.gmra.mxu0 %vm483_vm1, %v990_v45 }
  0x57   : > { %4351 = vmatmul.mubr.msk.bf16.gmra.mxu1 %vm483_vm1, %v419_v46  ;;  %4443 = vmatpush3.bf16.msra.mxu0 %v1716_v47  ;;  %v987_v46 = vld [vmem:[%s4923_s21 + $0x112] sm:$0xff]  ;;  %v988_v47 = vld [vmem:[%s4923_s21 + $0x11a] sm:$0x3f] }
  0x58   : > { %4354 = vmatprep.mubr.msk.bf16.mxu1 %vm483_vm1, %v420_v48  ;;  %4372 = vmatprep.mubr.msk.bf16.mxu0 %vm483_vm1, %v991_v49  ;;  %v1605_v48 = vld [vmem:[%s4923_s21 + $0x13] sm:$0xff]  ;;  %v1006_v52 = vpack.c.bf16 %v988_v47, %v987_v46  ;;  %v1630_v47 = vld [vmem:[%s4923_s21 + $0xdb] sm:$0xff] }
  0x59   : > { %4669 = vmatprep.subr.msk.bf16.mxu0 %vm538_vm0, %v5050_v50  ;;  %v1613_v50 = vld [vmem:[%s4923_s21 + $0x53] sm:$0xff] }
  0x5a   : > { %v1645_v1 = vpack.c.bf16 %v1614_v63, %v1613_v50  ;;  %v1942_v50 = vld [vmem:[%s4923_s21 + $0x6c] sm:$0xff] }
  0x5b   : > { %v1633_v63 = vld [vmem:[%s4923_s21 + $0xf3] sm:$0xff] }
  0x5e   : > { %4373 = vmatmul.mubr.msk.bf16.gmra.mxu0 %vm483_vm1, %v992_v59 }
  0x5f   : > { %4355 = vmatmul.mubr.msk.bf16.gmra.mxu1 %vm483_vm1, %v421_v60  ;;  %4376 = vmatprep.mubr.msk.bf16.mxu0 %vm483_vm1, %v993_v61  ;;  %v5150_v60 = vld [vmem:[%s6613_s1 + $0x10] sm:$0x3] }
  0x60   : > { %4358 = vmatprep.mubr.msk.bf16.mxu1 %vm483_vm1, %v422_v62  ;;  %v1612_v62 = vld [vmem:[%s4923_s21 + $0x4b] sm:$0xff] }
  0x66   : > { %4377 = vmatmul.mubr.msk.bf16.gmra.mxu0 %vm483_vm1, %v994_v7 }
  0x67   : > { %4359 = vmatmul.mubr.msk.bf16.gmra.mxu1 %vm483_vm1, %v423_v8  ;;  %4380 = vmatprep.mubr.msk.bf16.mxu0 %vm483_vm1, %v995_v9  ;;  %v1647_v8 = vpack.c.bf16 %v1618_v5, %v1617_v4 }
  0x68   : > { %4362 = vmatprep.mubr.msk.bf16.mxu1 %vm483_vm1, %v424_v10  ;;  %v1313_v10 = vld [vmem:[%s4923_s21 + $0x122] sm:$0xff] }
  0x6e   : > { %4381 = vmatmul.mubr.msk.bf16.gmra.mxu0 %vm483_vm1, %v996_v17 }
  0x6f   : > { %4363 = vmatmul.mubr.msk.bf16.gmra.mxu1 %vm483_vm1, %v425_v18  ;;  %4384 = vmatprep.mubr.msk.bf16.mxu0 %vm483_vm1, %v997_v19  ;;  %v1648_v18 = vpack.c.bf16 %v1620_v12, %v1619_v11  ;;  %v1945_v11 = vld [vmem:[%s4923_s21 + $0x84] sm:$0xff]  ;;  %v3325_v12 = vld [vmem:[%s6615_s3 + $0x58] sm:$0xff] }
  0x70   : > { %4406 = vmatprep.mubr.msk.bf16.mxu1 %vm483_vm1, %v990_v45  ;;  %v1005_v45 = vpack.c.bf16 %v986_v43, %v985_v42  ;;  %v1628_v42 = vld [vmem:[%s4923_s21 + $0xcb] sm:$0xff] }
  0x71   : > { %v1937_v43 = vld [vmem:[%s4923_s21 + $0x44] sm:$0xff] }
  0x76   : > { %4385 = vmatmul.mubr.msk.bf16.gmra.mxu0 %vm483_vm1, %v998_v24 }
  0x77   : > { %4407 = vmatmul.mubr.msk.bf16.vlgmr.msra.gmra.mxu1 %vm483_vm1, %v991_v49  ;;  %4388 = vmatprep.mubr.msk.bf16.mxu0 %vm483_vm1, %v999_v26  ;;  %v1606_v49 = vld [vmem:[%s4923_s21 + $0x1b] sm:$0xff] }
  0x78   : > { %4410 = vmatprep.mubr.msk.bf16.mxu1 %vm483_vm1, %v992_v59  ;;  %4481 = vmatpush3.bf16.msra.mxu1 %v2042_v27  ;;  %v1641_v53 = vpack.c.bf16 %v1606_v49, %v1605_v48  ;;  %v1643_v59 = vpack.c.bf16 %v1610_v56, %v1609_v55  ;;  %v1933_v27 = vld [vmem:[%s4923_s21 + $0x24] sm:$0xff]  ;;  %v1939_v48 = vld [vmem:[%s4923_s21 + $0x54] sm:$0xff]  ;;  %v1940_v49 = vld [vmem:[%s4923_s21 + $0x5c] sm:$0xff] }
  0x79   : > { %4670 = vmatprep.subr.msk.bf16.mxu1 %vm538_vm0, %v5101_v28  ;;  %v5200_v35 = vpack.c.bf16 %v1934_v30, %v1933_v27  ;;  %v1938_v28 = vld [vmem:[%s4923_s21 + $0x4c] sm:$0xff]  ;;  %v3322_v55 = vld [vmem:[%s6615_s3 + $0x40] sm:$0xff]  ;;  %v5240_v56 = vpack.c.bf16 %v1940_v49, %v1939_v48  ;;  %v1955_v48 = vld [vmem:[%s4923_s21 + $0xd4] sm:$0xff] }
  0x7a   : > { %v1640_v27 = vld [vmem:[%s4923_s21 + $0x12b] sm:$0x3f]  ;;  %v1956_v49 = vld [vmem:[%s4923_s21 + $0xdc] sm:$0xff] }
  0x7b   : > { %v3332_v30 = vld [vmem:[%s6615_s3 + $0x90] sm:$0xff] }
  0x7e   : > { %4389 = vmatmul.mubr.msk.bf16.gmra.mxu0 %vm483_vm1, %v1000_v32 }
  0x7f   : > { %4411 = vmatmul.mubr.msk.bf16.gmra.mxu1 %vm483_vm1, %v993_v61  ;;  %4392 = vmatprep.mubr.msk.bf16.mxu0 %vm483_vm1, %v1001_v33  ;;  %v1611_v61 = vld [vmem:[%s4923_s21 + $0x43] sm:$0xff] }
  0x80   : > { %4414 = vmatprep.mubr.msk.bf16.mxu1 %vm483_vm1, %v994_v7  ;;  %v1644_v0 = vpack.c.bf16 %v1612_v62, %v1611_v61  ;;  %v1646_v7 = vpack.c.bf16 %v1616_v3, %v1615_v2  ;;  %v3321_v61 = vld [vmem:[%s6615_s3 + $0x38] sm:$0xff]  ;;  %v3324_v62 = vld [vmem:[%s6615_s3 + $0x50] sm:$0xff] }
  0x81   : > { %v1944_v2 = vld [vmem:[%s4923_s21 + $0x7c] sm:$0xff] }
  0x86   : > { %4393 = vmatmul.mubr.msk.bf16.gmra.mxu0 %vm483_vm1, %v1002_v38 }
  0x87   : > { %4415 = vmatmul.mubr.msk.bf16.gmra.mxu1 %vm483_vm1, %v995_v9  ;;  %4396 = vmatprep.mubr.msk.bf16.mxu0 %vm483_vm1, %v1003_v39  ;;  %v1331_v9 = vpack.c.bf16 %v1312_v6, %v987_v46  ;;  %v1629_v46 = vld [vmem:[%s4923_s21 + $0xd3] sm:$0xff]  ;;  %v3323_v6 = vld [vmem:[%s6615_s3 + $0x48] sm:$0xff] }
  0x88   : > { %4418 = vmatprep.mubr.msk.bf16.mxu1 %vm483_vm1, %v996_v17  ;;  %v1932_v17 = vld [vmem:[%s4923_s21 + $0x1c] sm:$0xff]  ;;  %v1653_v54 = vpack.c.bf16 %v1630_v47, %v1629_v46  ;;  %v1954_v46 = vld [vmem:[%s4923_s21 + $0xcc] sm:$0xff] }
  0x89   : > { %v1967_v23 = vpack.c.bf16 %v1932_v17, %v1931_v16  ;;  %v1638_v16 = vld [vmem:[%s4923_s21 + $0x11b] sm:$0xff] }
  0x8a   : > { %v1947_v17 = vld [vmem:[%s4923_s21 + $0x94] sm:$0xff]  ;;  %v1657_v21 = vpack.c.bf16 %v1638_v16, %v1637_v15 }
  0x8b   : > { %v3341_v16 = vld [vmem:[%s6615_s3 + $0xd8] sm:$0xff] }
  0x8e   : > { %4397 = vmatmul.mubr.msk.bf16.gmra.mxu0 %vm483_vm1, %v1004_v44 }
  0x8f   : > { %4419 = vmatmul.mubr.msk.bf16.gmra.mxu1 %vm483_vm1, %v997_v19  ;;  %4400 = vmatprep.mubr.msk.bf16.mxu0 %vm483_vm1, %v1005_v45  ;;  %v1332_v19 = vpack.c.bf16 %v1314_v13, %v1313_v10  ;;  %v1636_v10 = vld [vmem:[%s4923_s21 + $0x10b] sm:$0xff] }
  0x90   : > { %4422 = vmatprep.mubr.msk.bf16.mxu1 %vm483_vm1, %v998_v24  ;;  %v1623_v24 = vld [vmem:[%s4923_s21 + $0xa3] sm:$0xff]  ;;  %v3328_v13 = vld [vmem:[%s6615_s3 + $0x70] sm:$0xff] }
  0x96   : > { %4401 = vmatmul.mubr.msk.bf16.gmra.mxu0 %vm483_vm1, %v1006_v52  ;;  %v1652_v52 = vpack.c.bf16 %v1628_v42, %v1627_v41 }
  0x97   : > { %4423 = vmatmul.mubr.msk.bf16.gmra.mxu1 %vm483_vm1, %v999_v26  ;;  %4444 = vmatprep.mubr.msk.bf16.mxu0 %vm483_vm1, %v1641_v53  ;;  %v1624_v26 = vld [vmem:[%s4923_s21 + $0xab] sm:$0xff]  ;;  %v5232_v53 = vpack.c.bf16 %v1938_v28, %v1937_v43  ;;  %v3333_v43 = vld [vmem:[%s6615_s3 + $0x98] sm:$0xff] }
  0x98   : > { %4426 = vmatprep.mubr.msk.bf16.mxu1 %vm483_vm1, %v1000_v32  ;;  %v1935_v32 = vld [vmem:[%s4923_s21 + $0x34] sm:$0xff]  ;;  %v1650_v34 = vpack.c.bf16 %v1624_v26, %v1623_v24  ;;  %v1639_v26 = vld [vmem:[%s4923_s21 + $0x123] sm:$0xff] }
  0x99   : > { %v1953_v28 = vld [vmem:[%s4923_s21 + $0xc4] sm:$0xff] }
  0x9e   : > { %4445 = vmatmul.mubr.msk.bf16.vlgmr.msra.gmra.mxu0 %vm483_vm1, %v1642_v57  ;;  %v1631_v57 = vld [vmem:[%s4923_s21 + $0xe3] sm:$0xff] }
  0x9f   : > { %4427 = vmatmul.mubr.msk.bf16.gmra.mxu1 %vm483_vm1, %v1001_v33  ;;  %4519 = vmatpush3.bf16.msra.mxu0 %v2368_v58  ;;  %v1936_v33 = vld [vmem:[%s4923_s21 + $0x3c] sm:$0xff]  ;;  %v1632_v58 = vld [vmem:[%s4923_s21 + $0xeb] sm:$0xff] }
  0xa0   : > { %4430 = vmatprep.mubr.msk.bf16.mxu1 %vm483_vm1, %v1002_v38  ;;  %4448 = vmatprep.mubr.msk.bf16.mxu0 %vm483_vm1, %v1643_v59  ;;  %v3318_v38 = vld [vmem:[%s6615_s3 + $0x20] sm:$0xff]  ;;  %v1654_v3 = vpack.c.bf16 %v1632_v58, %v1631_v57  ;;  %v3020_v58 = vsel %vm538_vm0, %v5150_v60, 0 }
  0xa1   : > { %4671 = vmatprep.subr.msk.bf16.mxu0 %vm538_vm0, %v5150_v60  ;;  %3372 = vperm.xlu0 %4716, %v3318_v38   ;;  %v1941_v59 = vld [vmem:[%s4923_s21 + $0x64] sm:$0xff]  ;;  %v3337_v60 = vld [vmem:[%s6615_s3 + $0xb8] sm:$0xff] }
  0xa2   : > { %v5262_v4 = vpack.c.bf16 %v1942_v50, %v1941_v59  ;;  %v3334_v38 = vld [vmem:[%s6615_s3 + $0xa0] sm:$0xff]  ;;  %v5365_v59 = vpack.c.bf16 %v1956_v49, %v1955_v48  ;;  %v1966_v48 = vld [vmem:[%s4923_s21 + $0x12c] sm:$0x3f] }
  0xa6   : > { %4449 = vmatmul.mubr.msk.bf16.gmra.mxu0 %vm483_vm1, %v1644_v0  ;;  %v1634_v0 = vld [vmem:[%s4923_s21 + $0xfb] sm:$0xff] }
  0xa7   : > { %4431 = vmatmul.mubr.msk.bf16.gmra.mxu1 %vm483_vm1, %v1003_v39  ;;  %4452 = vmatprep.mubr.msk.bf16.mxu0 %vm483_vm1, %v1645_v1  ;;  %v5208_v39 = vpack.c.bf16 %v1936_v33, %v1935_v32  ;;  %v1943_v1 = vld [vmem:[%s4923_s21 + $0x74] sm:$0xff]  ;;  %v1655_v5 = vpack.c.bf16 %v1634_v0, %v1633_v63  ;;  %v1952_v33 = vld [vmem:[%s4923_s21 + $0xbc] sm:$0xff] }
  0xa8   : > { %4434 = vmatprep.mubr.msk.bf16.mxu1 %vm483_vm1, %v1004_v44  ;;  %v3317_v44 = vld [vmem:[%s6615_s3 + $0x18] sm:$0xff]  ;;  %v3340_v63 = vld [vmem:[%s6615_s3 + $0xd0] sm:$0xff] }
  0xa9   : > { %3367 = vperm.xlu1 %4717, %v3317_v44   ;;  %v1951_v32 = vld [vmem:[%s4923_s21 + $0xb4] sm:$0xff] }
  0xaa   : > { %v3336_v44 = vld [vmem:[%s6615_s3 + $0xb0] sm:$0xff] }
  0xad   : > { %3377 = vperm.xlu1 %4717, %v3319_v25   ;;  %v3335_v25 = vld [vmem:[%s6615_s3 + $0xa8] sm:$0xff] }
  0xae   : > { %4453 = vmatmul.mubr.msk.bf16.gmra.mxu0 %vm483_vm1, %v1646_v7  ;;  %v3326_v7 = vld [vmem:[%s6615_s3 + $0x60] sm:$0xff] }
  0xaf   : > { %4435 = vmatmul.mubr.msk.bf16.gmra.mxu1 %vm483_vm1, %v1005_v45  ;;  %4456 = vmatprep.mubr.msk.bf16.mxu0 %vm483_vm1, %v1647_v8  ;;  %v3320_v45 = vld [vmem:[%s6615_s3 + $0x30] sm:$0xff]  ;;  %v5270_v8 = vpack.c.bf16 %v1944_v2, %v1943_v1 }
  0xb0   : > { %4438 = vmatprep.mubr.msk.bf16.mxu1 %vm483_vm1, %v1331_v9  ;;  %3382 = vperm.xlu0 %4716, %v3320_v45   ;;  %v1635_v9 = vld [vmem:[%s4923_s21 + $0x103] sm:$0xff]  ;;  %v1958_v1 = vld [vmem:[%s4923_s21 + $0xec] sm:$0xff] }
  0xb1   : > { %3387 = vperm.xlu1 %4717, %v3321_v61  }
  0xb4   : > { %3392 = vperm.xlu0 %4716, %v3322_v55   ;;  %v3338_v55 = vld [vmem:[%s6615_s3 + $0xc0] sm:$0xff] }
  0xb5   : > { %3397 = vperm.xlu1 %4717, %v3323_v6  }
  0xb6   : > { %4457 = vmatmul.mubr.msk.bf16.gmra.mxu0 %vm483_vm1, %v1648_v18  ;;  %v1948_v18 = vld [vmem:[%s4923_s21 + $0x9c] sm:$0xff] }
  0xb7   : > { %4439 = vmatmul.mubr.msk.bf16.gmra.mxu1 %vm483_vm1, %v1332_v19  ;;  %4460 = vmatprep.mubr.msk.bf16.mxu0 %vm483_vm1, %v1649_v20  ;;  %v1656_v19 = vpack.c.bf16 %v1636_v10, %v1635_v9  ;;  %v5292_v20 = vpack.c.bf16 %v1946_v14, %v1945_v11  ;;  %v5300_v24 = vpack.c.bf16 %v1948_v18, %v1947_v17  ;;  %v3339_v10 = vld [vmem:[%s6615_s3 + $0xc8] sm:$0xff]  ;;  %v3344_v17 = vld [vmem:[%s6615_s3 + $0xf0] sm:$0xff] }
  0xb8   : > { %4482 = vmatprep.mubr.msk.bf16.mxu1 %vm483_vm1, %v1967_v23  ;;  %3402 = vperm.xlu0 %4716, %v3324_v62   ;;  %v3330_v23 = vld [vmem:[%s6615_s3 + $0x80] sm:$0xff] }
  0xb9   : > { %3407 = vperm.xlu1 %4717, %v3325_v12  }
  0xbc   : > { %3412 = vperm.xlu0 %4716, %v3326_v7  }
  0xbd   : > { %3417 = vperm.xlu1 %4717, %v3327_v22  }
  0xbe   : > { %4461 = vmatmul.mubr.msk.bf16.gmra.mxu0 %vm483_vm1, %v1650_v34  ;;  %v1658_v34 = vpack.c.bf16 %v1640_v27, %v1639_v26 }
  0xbf   : > { %4483 = vmatmul.mubr.msk.bf16.vlgmr.msra.gmra.mxu1 %vm483_vm1, %v5200_v35  ;;  %4464 = vmatprep.mubr.msk.bf16.mxu0 %vm483_vm1, %v1651_v36  ;;  %v5320_v36 = vpack.c.bf16 %v1950_v31, %v1949_v51  ;;  %v3343_v51 = vld [vmem:[%s6615_s3 + $0xe8] sm:$0xff]  ;;  %v3346_v31 = vld [vmem:[%s6615_s3 + $0x100] sm:$0xff] }
  0xc0   : > { %4486 = vmatprep.mubr.msk.bf16.mxu1 %vm483_vm1, %v5208_v39  ;;  %4557 = vmatpush3.bf16.msra.mxu1 %v2694_v40  ;;  %v5328_v40 = vpack.c.bf16 %v1952_v33, %v1951_v32 }
  0xc1   : > { %3422 = vperm.xlu0 %4716, %v3328_v13   ;;  %3427 = vperm.xlu1 %4717, %v3329_v29  }
  0xc5   : > { %3432 = vperm.xlu0 %4716, %v3330_v23   ;;  %3437 = vperm.xlu1 %4717, %v3331_v37   ;;  %v1963_v23 = vld [vmem:[%s4923_s21 + $0x114] sm:$0xff] }
  0xc6   : > { %4465 = vmatmul.mubr.msk.bf16.gmra.mxu0 %vm483_vm1, %v1652_v52 }
  0xc7   : > { %4487 = vmatmul.mubr.msk.bf16.gmra.mxu1 %vm483_vm1, %v5232_v53  ;;  %4468 = vmatprep.mubr.msk.bf16.mxu0 %vm483_vm1, %v1653_v54  ;;  %v5355_v54 = vpack.c.bf16 %v1954_v46, %v1953_v28  ;;  %v5472_v46 = vld [vmem:[%s4923_s21 + $0x124] sm:$0xff] }
  0xc8   : > { %4490 = vmatprep.mubr.msk.bf16.mxu1 %vm483_vm1, %v5240_v56 }
  0xc9   : > { %3442 = vperm.xlu0 %4716, %v3332_v30   ;;  %3447 = vperm.xlu1 %4717, %v3333_v43  }
  0xcd   : > { %3452 = vperm.xlu0 %4716, %v3334_v38   ;;  %3457 = vperm.xlu1 %4717, %v3335_v25  }
  0xce   : > { %4469 = vmatmul.mubr.msk.bf16.gmra.mxu0 %vm483_vm1, %v1654_v3  ;;  %v1959_v3 = vld [vmem:[%s4923_s21 + $0xf4] sm:$0xff] }
  0xcf   : > { %4491 = vmatmul.mubr.msk.bf16.gmra.mxu1 %vm483_vm1, %v5262_v4  ;;  %4472 = vmatprep.mubr.msk.bf16.mxu0 %vm483_vm1, %v1655_v5  ;;  %v1960_v5 = vld [vmem:[%s4923_s21 + $0xfc] sm:$0xff] }
  0xd0   : > { %4494 = vmatprep.mubr.msk.bf16.mxu1 %vm483_vm1, %v5270_v8  ;;  %v5409_v12 = vpack.c.bf16 %v1960_v5, %v1959_v3 }
  0xd1   : > { %3462 = vperm.xlu0 %4716, %v3336_v44   ;;  %3467 = vperm.xlu1 %4717, %v3337_v60   ;;  %v3345_v44 = vld [vmem:[%s6615_s3 + $0xf8] sm:$0xff]  ;;  %v3650_v60 = vld [vmem:[%s5484_s26] sm:$0x1] }
  0xd5   : > { %3472 = vperm.xlu0 %4716, %v3338_v55   ;;  %3477 = vperm.xlu1 %4717, %v3339_v10  }
  0xd6   : > { %4473 = vmatmul.mubr.msk.bf16.gmra.mxu0 %vm483_vm1, %v1656_v19 }
  0xd7   : > { %4495 = vmatmul.mubr.msk.bf16.gmra.mxu1 %vm483_vm1, %v5292_v20  ;;  %4476 = vmatprep.mubr.msk.bf16.mxu0 %vm483_vm1, %v1657_v21  ;;  %v1962_v21 = vld [vmem:[%s4923_s21 + $0x10c] sm:$0xff] }
  0xd8   : > { %4498 = vmatprep.mubr.msk.bf16.mxu1 %vm483_vm1, %v5300_v24 }
  0xd9   : > { %3482 = vperm.xlu0 %4716, %v3340_v63   ;;  %3487 = vperm.xlu1 %4717, %v3341_v16   ;;  %v2586_v16 = vld [vmem:[%s4923_s21 + $0x3d] sm:$0xff] }
  0xdd   : > { %3497 = vperm.xlu1 %4717, %v3343_v51  }
  0xde   : > { %v4294_v41 = vpop.f32.mrf.mxu0  ;;  %4477 = vmatmul.mubr.msk.bf16.gmra.mxu0 %vm483_vm1, %v1658_v34 }
  0xdf   : > { %v5331_v42 = vpop.f32.mrf.mxu1  ;;  %4499 = vmatmul.mubr.msk.bf16.gmra.mxu1 %vm483_vm1, %v5320_v36  ;;  %4520 = vmatprep.mubr.msk.bf16.mxu0 %vm483_vm1, %v5200_v35 }
  0xe0   : > { %v5343_v45 = vpop.f32.mrf.mxu0  ;;  %4502 = vmatprep.mubr.msk.bf16.mxu1 %vm483_vm1, %v5328_v40 }
  0xe1   : > { %v5349_v47 = vpop.f32.mrf.mxu1  ;;  %3507 = vperm.xlu1 %4717, %v3345_v44   ;;  %v2589_v44 = vld [vmem:[%s4923_s21 + $0x55] sm:$0xff] }
  0xe2   : > { %v4295_v35 = vpop.f32.mrf.mxu0 }
  0xe3   : > { %v5353_v52 = vpop.f32.mrf.mxu1 }
  0xe4   : > { %v579_v57 = vpop.f32.mrf.mxu0 }
  0xe5   : > { %v5367_v61 = vpop.f32.mrf.mxu1 }
  0xe6   : > { %v5369_v62 = vpop.f32.mrf.mxu0  ;;  %4521 = vmatmul.mubr.msk.bf16.vlgmr.msra.gmra.mxu0 %vm483_vm1, %v5208_v39  ;;  %v1957_v39 = vld [vmem:[%s4923_s21 + $0xe4] sm:$0xff] }
  0xe7   : > { %v5373_v50 = vpop.f32.mrf.mxu1  ;;  %4503 = vmatmul.mubr.msk.bf16.gmra.mxu1 %vm483_vm1, %v5355_v54  ;;  %4595 = vmatpush3.bf16.msra.mxu0 %v3020_v58  ;;  %v5399_v9 = vpack.c.bf16 %v1958_v1, %v1957_v39  ;;  %v1984_v58 = vpack.c.bf16 %v1966_v48, %v5472_v46 }
  0xe8   : > { %v5383_v0 = vpop.f32.mrf.mxu0  ;;  %4506 = vmatprep.mubr.msk.bf16.mxu1 %vm483_vm1, %v5365_v59  ;;  %4524 = vmatprep.mubr.msk.bf16.mxu0 %vm483_vm1, %v5232_v53  ;;  %v3342_v53 = vld [vmem:[%s6615_s3 + $0xe0] sm:$0xff] }
  0xe9   : > { %v5391_v2 = vpop.f32.mrf.mxu1  ;;  %3492 = vperm.xlu0 %4716, %v3342_v53  }
  0xea   : > { %v5395_v6 = vpop.f32.mrf.mxu0 }
  0xeb   : > { %v5397_v7 = vpop.f32.mrf.mxu1 }
  0xec   : > { %v5407_v11 = vpop.f32.mrf.mxu0 }
  0xed   : > { %v5411_v13 = vpop.f32.mrf.mxu1  ;;  %3502 = vperm.xlu0 %4716, %v3344_v17  }
  0xee   : > { %v5413_v14 = vpop.f32.mrf.mxu0  ;;  %4525 = vmatmul.mubr.msk.bf16.gmra.mxu0 %vm483_vm1, %v5240_v56  ;;  %v1961_v56 = vld [vmem:[%s4923_s21 + $0x104] sm:$0xff] }
  0xef   : > { %v4332_v15 = vpop.f32.mrf.mxu1  ;;  %4507 = vmatmul.mubr.msk.bf16.gmra.mxu1 %vm483_vm1, %v5399_v9  ;;  %4528 = vmatprep.mubr.msk.bf16.mxu0 %vm483_vm1, %v5262_v4  ;;  %v1964_v4 = vld [vmem:[%s4923_s21 + $0x11c] sm:$0xff]  ;;  %v5440_v30 = vpack.c.bf16 %v1962_v21, %v1961_v56  ;;  %v2588_v56 = vld [vmem:[%s4923_s21 + $0x4d] sm:$0xff] }
  0xf0   : > { %v5427_v18 = vadd.f32 %v4332_v15, %v4294_v41  ;;  %v5429_v19 = vpop.f32.mrf.mxu0  ;;  %4510 = vmatprep.mubr.msk.bf16.mxu1 %vm483_vm1, %v5409_v12  ;;  %v5450_v34 = vpack.c.bf16 %v1964_v4, %v1963_v23 }
  0xf1   : > { %v810_v22 = vpop.f32.mrf.mxu1  ;;  %3512 = vperm.xlu0 %4716, %v3346_v31  }
  0xf2   : > { %v5438_v26 = vadd.f32 %v810_v22, %v5343_v45  ;;  %v4303_v27 = vpop.f32.mrf.mxu0  ;;  %v3348_v45 = vld [vmem:[%s6615_s3 + $0x110] sm:$0xff] }
  0xf3   : > { %v4333_v29 = vpop.f32.mrf.mxu1 }
  0xf4   : > { %v5448_v32 = vadd.f32 %v4333_v29, %v4295_v35  ;;  %v611_v33 = vpop.f32.mrf.mxu0  ;;  %v2584_v35 = vld [vmem:[%s4923_s21 + $0x2d] sm:$0xff] }
  0xf5   : > { %v813_v37 = vpop.f32.mrf.mxu1  ;;  %3522 = vperm.xlu0 %4716, %v3348_v45   ;;  %v2590_v45 = vld [vmem:[%s4923_s21 + $0x5d] sm:$0xff] }
  0xf6   : > { %v5452_v38 = vadd.f32 %v813_v37, %v579_v57  ;;  %v4306_v41 = vpop.f32.mrf.mxu0  ;;  %4529 = vmatmul.mubr.msk.bf16.gmra.mxu0 %vm483_vm1, %v5270_v8 }
  0xf7   : > { %v4336_v43 = vpop.f32.mrf.mxu1  ;;  %4511 = vmatmul.mubr.msk.bf16.gmra.mxu1 %vm483_vm1, %v5440_v30  ;;  %4532 = vmatprep.mubr.msk.bf16.mxu0 %vm483_vm1, %v5292_v20  ;;  %v2583_v20 = vld [vmem:[%s4923_s21 + $0x25] sm:$0xff] }
  0xf8   : > { %v5467_v28 = vadd.f32 %v4336_v43, %v5369_v62  ;;  %v624_v8 = vpop.f32.mrf.mxu0  ;;  %4514 = vmatprep.mubr.msk.bf16.mxu1 %vm483_vm1, %v5450_v34  ;;  %v3347_v62 = vld [vmem:[%s6615_s3 + $0x108] sm:$0xff]  ;;  %v2619_v39 = vpack.c.bf16 %v2584_v35, %v2583_v20 }
  0xf9   : > { %v826_v49 = vpop.f32.mrf.mxu1  ;;  %3517 = vperm.xlu1 %4717, %v3347_v62   ;;  %3654 = vperm.xlu0 %4716, %v3650_v60  }
  0xfa   : > { %v5478_v25 = vadd.f32 %v826_v49, %v5383_v0  ;;  %v4307_v55 = vpop.f32.mrf.mxu0  ;;  %v2592_v49 = vld [vmem:[%s4923_s21 + $0x6d] sm:$0xff] }
  0xfb   : > { %v4337_v57 = vpop.f32.mrf.mxu1 }
  0xfc   : > { %v5492_v63 = vadd.f32 %v4337_v57, %v5395_v6  ;;  %v627_v0 = vpop.f32.mrf.mxu0  ;;  %v3349_v6 = vld [vmem:[%s6615_s3 + $0x118] sm:$0x3f]  ;;  %v2622_v57 = vpack.c.bf16 %v2590_v45, %v2589_v44 }
  0xfd   : > { %v829_v1 = vpop.f32.mrf.mxu1  ;;  %3527 = vperm.xlu1 %4717, %v3349_v6   ;;  %v2594_v6 = vld [vmem:[%s4923_s21 + $0x7d] sm:$0xff] }
  0xfe   : > { %v5495_v3 = vadd.f32 %v829_v1, %v5407_v11  ;;  %v4310_v5 = vpop.f32.mrf.mxu0  ;;  %4533 = vmatmul.mubr.msk.bf16.gmra.mxu0 %vm483_vm1, %v5300_v24  ;;  %v2585_v11 = vld [vmem:[%s4923_s21 + $0x35] sm:$0xff]  ;;  %v2587_v24 = vld [vmem:[%s4923_s21 + $0x45] sm:$0xff]  ;;  %v2598_v45 = vld [vmem:[%s4923_s21 + $0x9d] sm:$0xff] }
  0xff   : > { %v4340_v10 = vpop.f32.mrf.mxu1  ;;  %4515 = vmatmul.mubr.msk.bf16.gmra.mxu1 %vm483_vm1, %v1984_v58  ;;  %4536 = vmatprep.mubr.msk.bf16.mxu0 %vm483_vm1, %v5320_v36  ;;  %v2620_v23 = vpack.c.bf16 %v2586_v16, %v2585_v11  ;;  %v2621_v29 = vpack.c.bf16 %v2588_v56, %v2587_v24  ;;  %v2595_v11 = vld [vmem:[%s4923_s21 + $0x85] sm:$0xff]  ;;  %v2596_v16 = vld [vmem:[%s4923_s21 + $0x8d] sm:$0xff] }
 0x100   : > { %v5506_v53 = vadd.f32 %v4340_v10, %v5413_v14  ;;  %v640_v15 = vpop.f32.mrf.mxu0  ;;  %4558 = vmatprep.mubr.msk.bf16.mxu1 %vm483_vm1, %v2619_v39  ;;  %v2593_v10 = vld [vmem:[%s4923_s21 + $0x75] sm:$0xff] }
 0x101   : > { %v842_v17 = vpop.f32.mrf.mxu1  ;;  %v2624_v56 = vpack.c.bf16 %v2594_v6, %v2593_v10 }
 0x102   : > { %v5514_v21 = vadd.f32 %v842_v17, %v5429_v19  ;;  %v4311_v36 = vpop.f32.mrf.mxu0 }
 0x103   : > { %v4341_v22 = vpop.f32.mrf.mxu1 }
 0x104   : > { %v5516_v4 = vadd.f32 %v4341_v22, %v4303_v27  ;;  %v643_v14 = vpop.f32.mrf.mxu0 }
 0x105   : > { %v845_v51 = vpop.f32.mrf.mxu1 }
 0x106   : > { %v5518_v31 = vadd.f32 %v845_v51, %v611_v33  ;;  %v4314_v37 = vpop.f32.mrf.mxu0  ;;  %4537 = vmatmul.mubr.msk.bf16.gmra.mxu0 %vm483_vm1, %v5328_v40  ;;  %v2591_v33 = vld [vmem:[%s4923_s21 + $0x65] sm:$0xff] }
 0x107   : > { %v4344_v19 = vpop.f32.mrf.mxu1  ;;  %4559 = vmatmul.mubr.msk.bf16.vlgmr.msra.gmra.mxu1 %vm483_vm1, %v2620_v23  ;;  %4540 = vmatprep.mubr.msk.bf16.mxu0 %vm483_vm1, %v5355_v54 }
 0x108   : > { %v5525_v43 = vadd.f32 %v4344_v19, %v4306_v41  ;;  %v656_v27 = vpop.f32.mrf.mxu0  ;;  %4562 = vmatprep.mubr.msk.bf16.mxu1 %vm483_vm1, %v2621_v29  ;;  %v2623_v41 = vpack.c.bf16 %v2592_v49, %v2591_v33  ;;  %v2599_v49 = vld [vmem:[%s4923_s21 + $0xa5] sm:$0xff] }
 0x109   : > { %v858_v48 = vpop.f32.mrf.mxu1 }
 0x10a   : > { %v5532_v20 = vadd.f32 %v858_v48, %v624_v8  ;;  %v4315_v35 = vpop.f32.mrf.mxu0  ;;  %v2290_v48 = vld [vmem:[%s4923_s21 + $0x12c] sm:$0xff] }
 0x10b   : > { %v4345_v40 = vpop.f32.mrf.mxu1 }
 0x10c   : > { %v5534_v58 = vadd.f32 %v4345_v40, %v4307_v55  ;;  %v659_v54 = vpop.f32.mrf.mxu0 }
 0x10d   : > { %v861_v62 = vpop.f32.mrf.mxu1 }
 0x10e   : > { %v5536_v60 = vadd.f32 %v861_v62, %v627_v0  ;;  %v4318_v39 = vpop.f32.mrf.mxu0  ;;  %4541 = vmatmul.mubr.msk.bf16.gmra.mxu0 %vm483_vm1, %v5365_v59  ;;  %v2309_v62 = vpack.c.bf16 %v2290_v48, %v5472_v46 }
 0x10f   : > { %v4348_v8 = vpop.f32.mrf.mxu1  ;;  %4563 = vmatmul.mubr.msk.bf16.gmra.mxu1 %vm483_vm1, %v2622_v57  ;;  %4544 = vmatprep.mubr.msk.bf16.mxu0 %vm483_vm1, %v5399_v9 }
 0x110   : > { %v5543_v1 = vadd.f32 %v4348_v8, %v4310_v5  ;;  %v5545_v55 = vpop.f32.mrf.mxu0  ;;  %4566 = vmatprep.mubr.msk.bf16.mxu1 %vm483_vm1, %v2623_v41  ;;  %v2625_v5 = vpack.c.bf16 %v2596_v16, %v2595_v11  ;;  %v2601_v16 = vld [vmem:[%s4923_s21 + $0xb5] sm:$0xff] }
 0x111   : > { %v874_v0 = vpop.f32.mrf.mxu1 }
 0x112   : > { %v5552_v17 = vadd.f32 %v874_v0, %v640_v15  ;;  %v4319_v59 = vpop.f32.mrf.mxu0 }
 0x113   : > { %v4349_v24 = vpop.f32.mrf.mxu1 }
 0x114   : > { %v5554_v22 = vadd.f32 %v4349_v24, %v4311_v36  ;;  %v5556_v9 = vpop.f32.mrf.mxu0 }
 0x115   : > { %v877_v23 = vpop.f32.mrf.mxu1 }
 0x116   : > { %v5558_v29 = vadd.f32 %v877_v23, %v643_v14  ;;  %v4370_v51 = vpop.f32.mrf.mxu0  ;;  %4545 = vmatmul.mubr.msk.bf16.gmra.mxu0 %vm483_vm1, %v5409_v12  ;;  %v2597_v14 = vld [vmem:[%s4923_s21 + $0x95] sm:$0xff] }
 0x117   : > { %v4352_v15 = vpop.f32.mrf.mxu1  ;;  %v5563_v19 = vadd.f32 %v4370_v51, %v5427_v18  ;;  %4567 = vmatmul.mubr.msk.bf16.gmra.mxu1 %vm483_vm1, %v2624_v56  ;;  %4548 = vmatprep.mubr.msk.bf16.mxu0 %vm483_vm1, %v5440_v30  ;;  %v2600_v18 = vld [vmem:[%s4923_s21 + $0xad] sm:$0xff]  ;;  %v2602_v56 = vld [vmem:[%s4923_s21 + $0xbd] sm:$0xff] }
 0x118   : > { %v5568_v36 = vadd.f32 %v4352_v15, %v4314_v37  ;;  %v1100_v44 = vpop.f32.mrf.mxu0  ;;  %4570 = vmatprep.mubr.msk.bf16.mxu1 %vm483_vm1, %v2625_v5  ;;  %v2626_v37 = vpack.c.bf16 %v2598_v45, %v2597_v14  ;;  %v2910_v5 = vld [vmem:[%s4923_s21 + $0x2e] sm:$0xff] }
 0x119   : > { %v890_v33 = vpop.f32.mrf.mxu1  ;;  %v5575_v12 = vadd.f32 %v1100_v44, %v5438_v26  ;;  %v2627_v26 = vpack.c.bf16 %v2600_v18, %v2599_v49  ;;  %v2604_v15 = vld [vmem:[%s4923_s21 + $0xcd] sm:$0xff] }
 0x11a   : > { %v5579_v40 = vadd.f32 %v890_v33, %v656_v27  ;;  %v4371_v57 = vpop.f32.mrf.mxu0  ;;  %v2628_v33 = vpack.c.bf16 %v2602_v56, %v2601_v16  ;;  %v2608_v16 = vld [vmem:[%s4923_s21 + $0xed] sm:$0xff] }
 0x11b   : > { %v4353_v41 = vpop.f32.mrf.mxu1  ;;  %v5582_v30 = vadd.f32 %v4371_v57, %v5448_v32 }
 0x11c   : > { %v5585_v8 = vadd.f32 %v4353_v41, %v4315_v35  ;;  %v1103_v10 = vpop.f32.mrf.mxu0  ;;  %v2291_v35 = vld [vmem:[%s4923_s21 + $0x134] sm:$0xff] }
 0x11d   : > { %v893_v6 = vpop.f32.mrf.mxu1  ;;  %v5588_v27 = vadd.f32 %v1103_v10, %v5452_v38  ;;  %v2292_v38 = vld [vmem:[%s4923_s21 + $0x13c] sm:$0x3f] }
 0x11e   : > { %v5590_v0 = vadd.f32 %v893_v6, %v659_v54  ;;  %v4374_v32 = vpop.f32.mrf.mxu0  ;;  %4549 = vmatmul.mubr.msk.bf16.gmra.mxu0 %vm483_vm1, %v5450_v34  ;;  %v2909_v34 = vld [vmem:[%s4923_s21 + $0x26] sm:$0xff]  ;;  %v2310_v45 = vpack.c.bf16 %v2292_v38, %v2291_v35  ;;  %v2605_v10 = vld [vmem:[%s4923_s21 + $0xd5] sm:$0xff] }
 0x11f   : > { %v4356_v11 = vpop.f32.mrf.mxu1  ;;  %v5595_v46 = vadd.f32 %v4374_v32, %v5467_v28  ;;  %4571 = vmatmul.mubr.msk.bf16.gmra.mxu1 %vm483_vm1, %v2626_v37  ;;  %4552 = vmatprep.mubr.msk.bf16.mxu0 %vm483_vm1, %v2309_v62  ;;  %v2603_v28 = vld [vmem:[%s4923_s21 + $0xc5] sm:$0xff]  ;;  %v2945_v49 = vpack.c.bf16 %v2910_v5, %v2909_v34 }
 0x120   : > { %v5602_v24 = vadd.f32 %v4356_v11, %v4318_v39  ;;  %v1116_v54 = vpop.f32.mrf.mxu0  ;;  %4574 = vmatprep.mubr.msk.bf16.mxu1 %vm483_vm1, %v2627_v26  ;;  %v2629_v57 = vpack.c.bf16 %v2604_v15, %v2603_v28  ;;  %v2912_v26 = vld [vmem:[%s4923_s21 + $0x3e] sm:$0xff]  ;;  %v2913_v32 = vld [vmem:[%s4923_s21 + $0x46] sm:$0xff]  ;;  %v2914_v11 = vld [vmem:[%s4923_s21 + $0x4e] sm:$0xff] }
 0x121   : > { %v906_v23 = vpop.f32.mrf.mxu1  ;;  %v5609_v51 = vadd.f32 %v1116_v54, %v5478_v25  ;;  %v2947_v28 = vpack.c.bf16 %v2914_v11, %v2913_v32 }
 0x122   : > { %v5614_v44 = vadd.f32 %v906_v23, %v5545_v55  ;;  %v4375_v14 = vpop.f32.mrf.mxu0 }
 0x123   : > { %v4357_v48 = vpop.f32.mrf.mxu1  ;;  %v5617_v39 = vadd.f32 %v4375_v14, %v5492_v63 }
 0x124   : > { %v5619_v18 = vadd.f32 %v4357_v48, %v4319_v59  ;;  %v1119_v25 = vpop.f32.mrf.mxu0 }
 0x125   : > { %v909_v41 = vpop.f32.mrf.mxu1  ;;  %v5622_v55 = vadd.f32 %v1119_v25, %v5495_v3  ;;  %v2911_v3 = vld [vmem:[%s4923_s21 + $0x36] sm:$0xff] }
 0x126   : > { %v5625_v37 = vadd.f32 %v909_v41, %v5556_v9  ;;  %v4378_v63 = vpop.f32.mrf.mxu0  ;;  %4553 = vmatmul.mubr.msk.bf16.gmra.mxu0 %vm483_vm1, %v2310_v45  ;;  %v2606_v9 = vld [vmem:[%s4923_s21 + $0xdd] sm:$0xff]  ;;  %v2946_v56 = vpack.c.bf16 %v2912_v26, %v2911_v3 }
 0x127   : > { %v5628_v62 = vpop.f32.mrf.mxu1  ;;  %v5631_v59 = vadd.f32 %v4378_v63, %v5506_v53  ;;  %4575 = vmatmul.mubr.msk.bf16.gmra.mxu1 %vm483_vm1, %v2628_v33  ;;  %4596 = vmatprep.mubr.msk.bf16.mxu0 %vm483_vm1, %v2945_v49  ;;  %v2607_v53 = vld [vmem:[%s4923_s21 + $0xe5] sm:$0xff]  ;;  %v2630_v23 = vpack.c.bf16 %v2606_v9, %v2605_v10  ;;  %v2609_v49 = vld [vmem:[%s4923_s21 + $0xf5] sm:$0xff] }
 0x128   : > { %v1132_v6 = vpop.f32.mrf.mxu0  ;;  %4578 = vmatprep.mubr.msk.bf16.mxu1 %vm483_vm1, %v2629_v57  ;;  %v2631_v14 = vpack.c.bf16 %v2608_v16, %v2607_v53  ;;  %v2915_v25 = vld [vmem:[%s4923_s21 + $0x56] sm:$0xff]  ;;  %v2916_v57 = vld [vmem:[%s4923_s21 + $0x5e] sm:$0xff]  ;;  %v2917_v63 = vld [vmem:[%s4923_s21 + $0x66] sm:$0xff] }
 0x129   : > { %v5642_v35 = vpop.f32.mrf.mxu1  ;;  %v5645_v38 = vadd.f32 %v1132_v6, %v5514_v21  ;;  %v2918_v10 = vld [vmem:[%s4923_s21 + $0x6e] sm:$0xff]  ;;  %v2948_v32 = vpack.c.bf16 %v2916_v57, %v2915_v25  ;;  %v2920_v25 = vld [vmem:[%s4923_s21 + $0x7e] sm:$0xff] }
 0x12a   : > { %v4379_v54 = vpop.f32.mrf.mxu0  ;;  %v2612_v6 = vld [vmem:[%s4923_s21 + $0x10d] sm:$0xff] }
 0x12b   : > { %v5649_v34 = vpop.f32.mrf.mxu1  ;;  %v5652_v5 = vadd.f32 %v4379_v54, %v5516_v4  ;;  %v2949_v54 = vpack.c.bf16 %v2918_v10, %v2917_v63  ;;  %v2922_v63 = vld [vmem:[%s4923_s21 + $0x8e] sm:$0xff] }
 0x12c   : > { %v1135_v15 = vpop.f32.mrf.mxu0 }
 0x12d   : > { %v5654_v21 = vpop.f32.mrf.mxu1  ;;  %v5657_v45 = vadd.f32 %v1135_v15, %v5518_v31  ;;  %v2610_v31 = vld [vmem:[%s4923_s21 + $0xfd] sm:$0xff] }
 0x12e   : > { %v4382_v48 = vpop.f32.mrf.mxu0  ;;  %4597 = vmatmul.mubr.msk.bf16.vlgmr.msra.gmra.mxu0 %vm483_vm1, %v2946_v56  ;;  %v2632_v16 = vpack.c.bf16 %v2610_v31, %v2609_v49  ;;  %v2919_v49 = vld [vmem:[%s4923_s21 + $0x76] sm:$0xff]  ;;  %v2921_v31 = vld [vmem:[%s4923_s21 + $0x86] sm:$0xff] }
 0x12f   : > { %v5660_v33 = vpop.f32.mrf.mxu1  ;;  %v5663_v4 = vadd.f32 %v4382_v48, %v5525_v43  ;;  %4579 = vmatmul.mubr.msk.bf16.gmra.mxu1 %vm483_vm1, %v2630_v23  ;;  %4600 = vmatprep.mubr.msk.bf16.mxu0 %vm483_vm1, %v2947_v28  ;;  %v2611_v43 = vld [vmem:[%s4923_s21 + $0x105] sm:$0xff]  ;;  %v2613_v48 = vld [vmem:[%s4923_s21 + $0x115] sm:$0xff] }
 0x130   : > { %v1148_v41 = vpop.f32.mrf.mxu0  ;;  %4582 = vmatprep.mubr.msk.bf16.mxu1 %vm483_vm1, %v2631_v14  ;;  %v2633_v23 = vpack.c.bf16 %v2612_v6, %v2611_v43  ;;  %v2615_v43 = vld [vmem:[%s4923_s21 + $0x125] sm:$0xff]  ;;  %v2616_v6 = vld [vmem:[%s4923_s21 + $0x12d] sm:$0xff] }
 0x131   : > { %v5674_v3 = vpop.f32.mrf.mxu1  ;;  %v5677_v26 = vadd.f32 %v1148_v41, %v5532_v20  ;;  %v2614_v41 = vld [vmem:[%s4923_s21 + $0x11d] sm:$0xff] }
 0x132   : > { %v4383_v9 = vpop.f32.mrf.mxu0 }
 0x133   : > { %v5681_v11 = vpop.f32.mrf.mxu1  ;;  %v5684_v53 = vadd.f32 %v4383_v9, %v5534_v58 }
 0x134   : > { %v1151_v56 = vpop.f32.mrf.mxu0 }
 0x135   : > { %v5686_v20 = vpop.f32.mrf.mxu1  ;;  %v5689_v28 = vadd.f32 %v1151_v56, %v5536_v60  ;;  %v2634_v56 = vpack.c.bf16 %v2614_v41, %v2613_v48  ;;  %v2924_v41 = vld [vmem:[%s4923_s21 + $0x9e] sm:$0xff] }
 0x136   : > { %v4386_v15 = vpop.f32.mrf.mxu0  ;;  %4601 = vmatmul.mubr.msk.bf16.gmra.mxu0 %vm483_vm1, %v2948_v32 }
 0x137   : > { %v5693_v14 = vadd.f32 %v4386_v15, %v5543_v1  ;;  %v4408_v58 = vpop.f32.mrf.mxu1  ;;  %4583 = vmatmul.mubr.msk.bf16.gmra.mxu1 %vm483_vm1, %v2632_v16  ;;  %4604 = vmatprep.mubr.msk.bf16.mxu0 %vm483_vm1, %v2949_v54  ;;  %v2950_v16 = vpack.c.bf16 %v2920_v25, %v2919_v49 }
 0x138   : > { %v5701_v57 = vadd.f32 %v4408_v58, %v5563_v19  ;;  %v1164_v60 = vpop.f32.mrf.mxu0  ;;  %4586 = vmatprep.mubr.msk.bf16.mxu1 %vm483_vm1, %v2633_v23  ;;  %v2951_v23 = vpack.c.bf16 %v2922_v63, %v2921_v31  ;;  %v2635_v58 = vpack.c.bf16 %v2616_v6, %v2615_v43  ;;  %v2618_v63 = vld [vmem:[%s4923_s21 + $0x13d] sm:$0x3f]  ;;  %v2926_v43 = vld [vmem:[%s4923_s21 + $0xae] sm:$0xff] }
 0x139   : > { %v5708_v1 = vadd.f32 %v1164_v60, %v5552_v17  ;;  %v1426_v10 = vpop.f32.mrf.mxu1  ;;  %v2923_v60 = vld [vmem:[%s4923_s21 + $0x96] sm:$0xff] }
 0x13a   : > { %v5713_v9 = vadd.f32 %v1426_v10, %v5575_v12  ;;  %v4387_v32 = vpop.f32.mrf.mxu0  ;;  %v2925_v10 = vld [vmem:[%s4923_s21 + $0xa6] sm:$0xff] }
 0x13b   : > { %v5716_v19 = vadd.f32 %v4387_v32, %v5554_v22  ;;  %v4409_v54 = vpop.f32.mrf.mxu1 }
 0x13c   : > { %v5719_v17 = vadd.f32 %v4409_v54, %v5582_v30  ;;  %v1167_v15 = vpop.f32.mrf.mxu0  ;;  %v2617_v30 = vld [vmem:[%s4923_s21 + $0x135] sm:$0xff]  ;;  %v2952_v54 = vpack.c.bf16 %v2924_v41, %v2923_v60  ;;  %v2928_v41 = vld [vmem:[%s4923_s21 + $0xbe] sm:$0xff] }
 0x13d   : > { %v5722_v12 = vadd.f32 %v1167_v15, %v5558_v29  ;;  %v5724_v49 = vpop.f32.mrf.mxu1  ;;  %v2953_v15 = vpack.c.bf16 %v2926_v43, %v2925_v10 }
 0x13e   : > { %v4390_v22 = vpop.f32.mrf.mxu0  ;;  %4605 = vmatmul.mubr.msk.bf16.gmra.mxu0 %vm483_vm1, %v2950_v16 }
 0x13f   : > { %v5728_v25 = vadd.f32 %v4390_v22, %v5568_v36  ;;  %v4412_v48 = vpop.f32.mrf.mxu1  ;;  %4587 = vmatmul.mubr.msk.bf16.gmra.mxu1 %vm483_vm1, %v2634_v56  ;;  %4608 = vmatprep.mubr.msk.bf16.mxu0 %vm483_vm1, %v2951_v23  ;;  %v2636_v23 = vpack.c.bf16 %v2618_v63, %v2617_v30  ;;  %v2929_v63 = vld [vmem:[%s4923_s21 + $0xc6] sm:$0xff] }
 0x140   : > { %v5736_v29 = vadd.f32 %v4412_v48, %v5595_v46  ;;  %v1180_v31 = vpop.f32.mrf.mxu0  ;;  %4590 = vmatprep.mubr.msk.bf16.mxu1 %vm483_vm1, %v2635_v58 }
 0x141   : > { %v5743_v36 = vadd.f32 %v1180_v31, %v5579_v40  ;;  %v1442_v6 = vpop.f32.mrf.mxu1 }
 0x142   : > { %v5746_v32 = vadd.f32 %v1442_v6, %v5609_v51  ;;  %v4391_v16 = vpop.f32.mrf.mxu0 }
 0x143   : > { %v5749_v56 = vadd.f32 %v4391_v16, %v5585_v8  ;;  %v4413_v46 = vpop.f32.mrf.mxu1 }
 0x144   : > { %v5752_v58 = vadd.f32 %v4413_v46, %v5617_v39  ;;  %v1183_v40 = vpop.f32.mrf.mxu0  ;;  %v2927_v39 = vld [vmem:[%s4923_s21 + $0xb6] sm:$0xff] }
 0x145   : > { %v5755_v22 = vadd.f32 %v1183_v40, %v5590_v0  ;;  %v1445_v51 = vpop.f32.mrf.mxu1  ;;  %v2954_v16 = vpack.c.bf16 %v2928_v41, %v2927_v39  ;;  %v2931_v39 = vld [vmem:[%s4923_s21 + $0xd6] sm:$0xff]  ;;  %v2933_v41 = vld [vmem:[%s4923_s21 + $0xe6] sm:$0xff] }
 0x146   : > { %v5758_v48 = vadd.f32 %v1445_v51, %v5622_v55  ;;  %v4394_v60 = vpop.f32.mrf.mxu0  ;;  %4609 = vmatmul.mubr.msk.bf16.gmra.mxu0 %vm483_vm1, %v2952_v54  ;;  %v2930_v55 = vld [vmem:[%s4923_s21 + $0xce] sm:$0xff] }
 0x147   : > { %v5762_v8 = vadd.f32 %v4394_v60, %v5602_v24  ;;  %v4416_v30 = vpop.f32.mrf.mxu1  ;;  %4591 = vmatmul.mubr.msk.bf16.gmra.mxu1 %vm483_vm1, %v2636_v23  ;;  %4612 = vmatprep.mubr.msk.bf16.mxu0 %vm483_vm1, %v2953_v15 }
 0x148   : > { %v5769_v0 = vadd.f32 %v4416_v30, %v5631_v59  ;;  %v1196_v31 = vpop.f32.mrf.mxu0  ;;  %v2955_v59 = vpack.c.bf16 %v2930_v55, %v2929_v63 }
 0x149   : > { %v5774_v10 = vadd.f32 %v1196_v31, %v5614_v44  ;;  %v1458_v43 = vpop.f32.mrf.mxu1  ;;  %v931_v44 = vadd.f32 %v5628_v62, %v5331_v42  ;;  %v2932_v42 = vld [vmem:[%s4923_s21 + $0xde] sm:$0xff]  ;;  %v934_v31 = vadd.f32 %v5649_v34, %v5353_v52  ;;  %v947_v34 = vadd.f32 %v5660_v33, %v5373_v50 }
 0x14a   : > { %v5777_v24 = vadd.f32 %v1458_v43, %v5645_v38  ;;  %v4395_v6 = vpop.f32.mrf.mxu0  ;;  %v2956_v43 = vpack.c.bf16 %v2932_v42, %v2931_v39  ;;  %v950_v39 = vadd.f32 %v5681_v11, %v5397_v7 }
 0x14b   : > { %v5780_v54 = vadd.f32 %v4395_v6, %v5619_v18  ;;  %v4417_v46 = vpop.f32.mrf.mxu1  ;;  %v926_v6 = vadd.f32 %v5654_v21, %v5367_v61 }
 0x14c   : > { %v5783_v23 = vadd.f32 %v4417_v46, %v5652_v5  ;;  %v1199_v15 = vpop.f32.mrf.mxu0  ;;  %v923_v5 = vadd.f32 %v5642_v35, %v5349_v47 }
 0x14d   : > { %v5788_v38 = vadd.f32 %v1199_v15, %v5625_v37  ;;  %v1461_v40 = vpop.f32.mrf.mxu1 }
 0x14e   : > { %v5791_v51 = vadd.f32 %v1461_v40, %v5657_v45  ;;  %v4398_v18 = vpop.f32.mrf.mxu0  ;;  %4613 = vmatmul.mubr.msk.bf16.gmra.mxu0 %vm483_vm1, %v2954_v16  ;;  %v2934_v45 = vld [vmem:[%s4923_s21 + $0xee] sm:$0xff] }
 0x14f   : > { %v5796_v60 = vadd.f32 %v4398_v18, %v931_v44  ;;  %v4420_v30 = vpop.f32.mrf.mxu1  ;;  %4616 = vmatprep.mubr.msk.bf16.mxu0 %vm483_vm1, %v2955_v59  ;;  %v2957_v46 = vpack.c.bf16 %v2934_v45, %v2933_v41  ;;  %v939_v44 = vadd.f32 %v5674_v3, %v5391_v2  ;;  %v2935_v18 = vld [vmem:[%s4923_s21 + $0xf6] sm:$0xff] }
 0x150   : > { %v5802_v37 = vadd.f32 %v4420_v30, %v5663_v4  ;;  %v1212_v62 = vpop.f32.mrf.mxu0  ;;  %v2937_v30 = vld [vmem:[%s4923_s21 + $0x106] sm:$0xff] }
 0x151   : > { %v5808_v63 = vadd.f32 %v1212_v62, %v923_v5  ;;  %v1474_v55 = vpop.f32.mrf.mxu1  ;;  %v2936_v5 = vld [vmem:[%s4923_s21 + $0xfe] sm:$0xff] }
 0x152   : > { %v5811_v47 = vadd.f32 %v1474_v55, %v5677_v26  ;;  %v4399_v35 = vpop.f32.mrf.mxu0  ;;  %v2958_v41 = vpack.c.bf16 %v2936_v5, %v2935_v18  ;;  %v1570_v18 = vadd.f32 %v5724_v49, %v5588_v27  ;;  %v2944_v49 = vld [vmem:[%s4923_s21 + $0x13e] sm:$0x3f] }
 0x153   : > { %v5815_v4 = vadd.f32 %v4399_v35, %v934_v31  ;;  %v4421_v16 = vpop.f32.mrf.mxu1 }
 0x154   : > { %v5818_v59 = vadd.f32 %v4421_v16, %v5684_v53  ;;  %v1215_v52 = vpop.f32.mrf.mxu0  ;;  %v2939_v16 = vld [vmem:[%s4923_s21 + $0x116] sm:$0xff] }
 0x155   : > { %v5822_v26 = vadd.f32 %v1215_v52, %v926_v6  ;;  %v1477_v15 = vpop.f32.mrf.mxu1 }
 0x156   : > { %v5825_v61 = vadd.f32 %v1477_v15, %v5689_v28  ;;  %v4402_v21 = vpop.f32.mrf.mxu0  ;;  %4617 = vmatmul.mubr.msk.bf16.gmra.mxu0 %vm483_vm1, %v2956_v43  ;;  %v2938_v28 = vld [vmem:[%s4923_s21 + $0x10e] sm:$0xff] }
 0x157   : > { %v5830_v53 = vadd.f32 %v4402_v21, %v947_v34  ;;  %v4424_v40 = vpop.f32.mrf.mxu1  ;;  %4620 = vmatprep.mubr.msk.bf16.mxu0 %vm483_vm1, %v2957_v46  ;;  %v2959_v31 = vpack.c.bf16 %v2938_v28, %v2937_v30  ;;  %v2940_v46 = vld [vmem:[%s4923_s21 + $0x11e] sm:$0xff]  ;;  %v2941_v34 = vld [vmem:[%s4923_s21 + $0x126] sm:$0xff]  ;;  %v2942_v15 = vld [vmem:[%s4923_s21 + $0x12e] sm:$0xff] }
 0x158   : > { %v5836_v50 = vadd.f32 %v4424_v40, %v5693_v14  ;;  %v1228_v33 = vpop.f32.mrf.mxu0 }
 0x159   : > { %v5842_v42 = vadd.f32 %v1228_v33, %v939_v44  ;;  %v1490_v62 = vpop.f32.mrf.mxu1  ;;  %v2961_v33 = vpack.c.bf16 %v2942_v15, %v2941_v34 }
 0x15a   : > { %v5845_v2 = vadd.f32 %v1490_v62, %v5708_v1  ;;  %v4403_v3 = vpop.f32.mrf.mxu0 }
 0x15b   : > { %v5847_v45 = vadd.f32 %v4403_v3, %v950_v39  ;;  %v4425_v14 = vpop.f32.mrf.mxu1 }
 0x15c   : > { %v5850_v55 = vadd.f32 %v4425_v14, %v5716_v19  ;;  %v5852_v7 = vpop.f32.mrf.mxu0 }
 0x15d   : > { %v1493_v11 = vpop.f32.mrf.mxu1 }
 0x15e   : > { %v5855_v35 = vadd.f32 %v1493_v11, %v5722_v12  ;;  %v4446_v1 = vpop.f32.mrf.mxu0  ;;  %4621 = vmatmul.mubr.msk.bf16.gmra.mxu0 %vm483_vm1, %v2958_v41 }
 0x15f   : > { %v4428_v43 = vpop.f32.mrf.mxu1  ;;  %v5859_v6 = vadd.f32 %v4446_v1, %v5701_v57  ;;  %4624 = vmatprep.mubr.msk.bf16.mxu0 %vm483_vm1, %v2959_v31  ;;  %v2960_v57 = vpack.c.bf16 %v2940_v46, %v2939_v16 }
 0x160   : > { %v5865_v19 = vadd.f32 %v4428_v43, %v5728_v25  ;;  %v1752_v52 = vpop.f32.mrf.mxu0 }
 0x161   : > { %v1506_v21 = vpop.f32.mrf.mxu1  ;;  %v5870_v12 = vadd.f32 %v1752_v52, %v5713_v9 }
 0x162   : > { %v5873_v44 = vadd.f32 %v1506_v21, %v5743_v36  ;;  %v4447_v40 = vpop.f32.mrf.mxu0 }
 0x163   : > { %v4429_v5 = vpop.f32.mrf.mxu1  ;;  %v5878_v25 = vadd.f32 %v4447_v40, %v5719_v17  ;;  %v2943_v17 = vld [vmem:[%s4923_s21 + $0x136] sm:$0xff] }
 0x164   : > { %v5881_v30 = vadd.f32 %v4429_v5, %v5749_v56  ;;  %v1755_v9 = vpop.f32.mrf.mxu0  ;;  %v2962_v1 = vpack.c.bf16 %v2944_v49, %v2943_v17 }
 0x165   : > { %v1509_v28 = vpop.f32.mrf.mxu1  ;;  %v5883_v39 = vadd.f32 %v1755_v9, %v1570_v18 }
 0x166   : > { %v5886_v36 = vadd.f32 %v1509_v28, %v5755_v22  ;;  %v4450_v62 = vpop.f32.mrf.mxu0  ;;  %4625 = vmatmul.mubr.msk.bf16.gmra.mxu0 %vm483_vm1, %v2960_v57 }
 0x167   : > { %v4432_v3 = vpop.f32.mrf.mxu1  ;;  %v5890_v27 = vadd.f32 %v4450_v62, %v5736_v29  ;;  %4628 = vmatprep.mubr.msk.bf16.mxu0 %vm483_vm1, %v2961_v33 }
 0x168   : > { %v5896_v56 = vadd.f32 %v4432_v3, %v5762_v8  ;;  %v1768_v41 = vpop.f32.mrf.mxu0 }
 0x169   : > { %v1522_v14 = vpop.f32.mrf.mxu1  ;;  %v5899_v31 = vadd.f32 %v1768_v41, %v5746_v32 }
 0x16a   : > { %v5902_v22 = vadd.f32 %v1522_v14, %v5774_v10  ;;  %v4451_v11 = vpop.f32.mrf.mxu0 }
 0x16b   : > { %v4433_v43 = vpop.f32.mrf.mxu1  ;;  %v5905_v29 = vadd.f32 %v4451_v11, %v5752_v58 }
 0x16c   : > { %v5908_v16 = vadd.f32 %v4433_v43, %v5780_v54  ;;  %v1771_v46 = vpop.f32.mrf.mxu0 }
 0x16d   : > { %v1525_v8 = vpop.f32.mrf.mxu1  ;;  %v5911_v52 = vadd.f32 %v1771_v46, %v5758_v48 }
 0x16e   : > { %v5914_v32 = vadd.f32 %v1525_v8, %v5788_v38  ;;  %v4454_v34 = vpop.f32.mrf.mxu0  ;;  %4629 = vmatmul.mubr.msk.bf16.gmra.mxu0 %vm483_vm1, %v2962_v1 }
 0x16f   : > { %v4436_v10 = vpop.f32.mrf.mxu1  ;;  %v5918_v15 = vadd.f32 %v4454_v34, %v5769_v0 }
 0x170   : > { %v5921_v58 = vadd.f32 %v4436_v10, %v5796_v60  ;;  %v1784_v54 = vpop.f32.mrf.mxu0 }
 0x171   : > { %v1538_v21 = vpop.f32.mrf.mxu1  ;;  %v5924_v40 = vadd.f32 %v1784_v54, %v5777_v24 }
 0x172   : > { %v5927_v48 = vadd.f32 %v1538_v21, %v5808_v63  ;;  %v4455_v38 = vpop.f32.mrf.mxu0 }
 0x173   : > { %v4437_v57 = vpop.f32.mrf.mxu1  ;;  %v5930_v18 = vadd.f32 %v4455_v38, %v5783_v23 }
 0x174   : > { %v5933_v5 = vadd.f32 %v4437_v57, %v5815_v4  ;;  %v1787_v0 = vpop.f32.mrf.mxu0 }
 0x175   : > { %v1541_v33 = vpop.f32.mrf.mxu1  ;;  %v5936_v60 = vadd.f32 %v1787_v0, %v5791_v51  ;;  %v942_v51 = vadd.f32 %v5686_v20, %v5411_v13 }
 0x176   : > { %v5939_v9 = vadd.f32 %v1541_v33, %v5822_v26  ;;  %v4458_v24 = vpop.f32.mrf.mxu0 }
 0x177   : > { %v4440_v28 = vpop.f32.mrf.mxu1  ;;  %v5942_v63 = vadd.f32 %v4458_v24, %v5802_v37  ;;  %v1276_v37 = vadd.f32 %v5852_v7, %v942_v51 }
 0x178   : > { %v5945_v62 = vadd.f32 %v4440_v28, %v5830_v53  ;;  %v1800_v23 = vpop.f32.mrf.mxu0 }
 0x179   : > { %v1554_v3 = vpop.f32.mrf.mxu1  ;;  %v5948_v4 = vadd.f32 %v1800_v23, %v5811_v47 }
 0x17a   : > { %v5953_v17 = vadd.f32 %v1554_v3, %v5842_v42  ;;  %v4459_v26 = vpop.f32.mrf.mxu0 }
 0x17b   : > { %v4441_v49 = vpop.f32.mrf.mxu1  ;;  %v5956_v41 = vadd.f32 %v4459_v26, %v5818_v59 }
 0x17c   : > { %v5960_v53 = vadd.f32 %v4441_v49, %v5847_v45  ;;  %v1803_v14 = vpop.f32.mrf.mxu0 }
 0x17d   : > { %v1557_v11 = vpop.f32.mrf.mxu1  ;;  %v5963_v47 = vadd.f32 %v1803_v14, %v5825_v61 }
 0x17e   : > { %v5965_v1 = vadd.f32 %v1557_v11, %v1276_v37  ;;  %v4462_v13 = vpop.f32.mrf.mxu0 }
 0x17f   : > { %v5968_v20 = vadd.f32 %v4462_v13, %v5836_v50  ;;  %v4484_v42 = vpop.f32.mrf.mxu1 }
 0x180   : > { %v5971_v59 = vadd.f32 %v4484_v42, %v5859_v6  ;;  %v1816_v43 = vpop.f32.mrf.mxu0  ;;  %v6623_v42 = vmov 0.0  }
 0x181   : > { %v5974_v7 = vadd.f32 %v1816_v43, %v5845_v2  ;;  %v2078_v45 = vpop.f32.mrf.mxu1  ;;  %4632 = vmatprep.subr.bf16.mxu1 %v6623_v42  ;;  %4636 = vmatprep.mubr.msk.bf16.mxu1 %vm4795_vm2, %v6623_v42 }
 0x182   : > { %v5977_v46 = vadd.f32 %v2078_v45, %v5870_v12  ;;  %v4463_v61 = vpop.f32.mrf.mxu0 }
 0x183   : > { %v5980_v8 = vadd.f32 %v4463_v61, %v5850_v55  ;;  %v4485_v34 = vpop.f32.mrf.mxu1 }
 0x184   : > { %v5983_v50 = vadd.f32 %v4485_v34, %v5878_v25  ;;  %v1819_v10 = vpop.f32.mrf.mxu0 }
 0x185   : > { %v5986_v6 = vadd.f32 %v1819_v10, %v5855_v35  ;;  %v2081_v54 = vpop.f32.mrf.mxu1 }
 0x186   : > { %v5989_v2 = vadd.f32 %v2081_v54, %v5883_v39  ;;  %v4466_v21 = vpop.f32.mrf.mxu0 }
 0x187   : > { %v5992_v12 = vadd.f32 %v4466_v21, %v5865_v19  ;;  %v4488_v38 = vpop.f32.mrf.mxu1 }
 0x188   : > { %v5995_v55 = vadd.f32 %v4488_v38, %v5890_v27  ;;  %v1832_v57 = vpop.f32.mrf.mxu0 }
 0x189   : > { %v5998_v25 = vadd.f32 %v1832_v57, %v5873_v44  ;;  %v2094_v0 = vpop.f32.mrf.mxu1 }
 0x18a   : > { %v6001_v35 = vadd.f32 %v2094_v0, %v5899_v31  ;;  %v4467_v33 = vpop.f32.mrf.mxu0 }
 0x18b   : > { %v6004_v39 = vadd.f32 %v4467_v33, %v5881_v30  ;;  %v4489_v24 = vpop.f32.mrf.mxu1 }
 0x18c   : > { %v6007_v19 = vadd.f32 %v4489_v24, %v5905_v29  ;;  %v1835_v28 = vpop.f32.mrf.mxu0 }
 0x18d   : > { %v6010_v27 = vadd.f32 %v1835_v28, %v5886_v36  ;;  %v2097_v23 = vpop.f32.mrf.mxu1 }
 0x18e   : > { %v6013_v44 = vadd.f32 %v2097_v23, %v5911_v52  ;;  %v4470_v3 = vpop.f32.mrf.mxu0 }
 0x18f   : > { %v6016_v31 = vadd.f32 %v4470_v3, %v5896_v56  ;;  %v4492_v51 = vpop.f32.mrf.mxu1 }
 0x190   : > { %v6019_v30 = vadd.f32 %v4492_v51, %v5918_v15  ;;  %v1848_v26 = vpop.f32.mrf.mxu0  ;;  %v4720_v15 = vld [vmem:[%s6617_s5 + $0x8] sm:$0xff]  }
 0x191   : > { %v6022_v29 = vadd.f32 %v1848_v26, %v5902_v22  ;;  %v2110_v49 = vpop.f32.mrf.mxu1  ;;  %4633 = vmatpush3.bf16.msra.mxu1 %v4720_v15 }
 0x192   : > { %v6025_v36 = vadd.f32 %v2110_v49, %v5924_v40  ;;  %v4471_v37 = vpop.f32.mrf.mxu0  ;;  %4634 = vmatprep.subr.bf16.mxu1 %v6623_v42 }
 0x193   : > { %v6028_v52 = vadd.f32 %v4471_v37, %v5908_v16  ;;  %v4493_v14 = vpop.f32.mrf.mxu1 }
 0x194   : > { %v6031_v56 = vadd.f32 %v4493_v14, %v5930_v18  ;;  %v1851_v11 = vpop.f32.mrf.mxu0 }
 0x195   : > { %v6037_v22 = vadd.f32 %v1851_v11, %v5914_v32  ;;  %v2113_v13 = vpop.f32.mrf.mxu1 }
 0x196   : > { %v6041_v40 = vadd.f32 %v2113_v13, %v5936_v60  ;;  %v4474_v16 = vpop.f32.mrf.mxu0 }
 0x197   : > { %v6044_v18 = vadd.f32 %v4474_v16, %v5921_v58  ;;  %v4496_v43 = vpop.f32.mrf.mxu1 }
 0x198   : > { %v6048_v45 = vadd.f32 %v4496_v43, %v5942_v63  ;;  %v1864_v32 = vpop.f32.mrf.mxu0 }
 0x199   : > { %v6051_v61 = vadd.f32 %v1864_v32, %v5927_v48  ;;  %v2126_v34 = vpop.f32.mrf.mxu1 }
 0x19a   : > { %v6054_v10 = vadd.f32 %v2126_v34, %v5948_v4  ;;  %v4475_v60 = vpop.f32.mrf.mxu0 }
 0x19b   : > { %v6057_v54 = vadd.f32 %v4475_v60, %v5933_v5  ;;  %v4497_v58 = vpop.f32.mrf.mxu1 }
 0x19c   : > { %v6060_v21 = vadd.f32 %v4497_v58, %v5956_v41  ;;  %v1867_v38 = vpop.f32.mrf.mxu0 }
 0x19d   : > { %v6063_v63 = vadd.f32 %v1867_v38, %v5939_v9  ;;  %v2129_v57 = vpop.f32.mrf.mxu1 }
 0x19e   : > { %v6066_v48 = vadd.f32 %v2129_v57, %v5963_v47  ;;  %v4478_v0 = vpop.f32.mrf.mxu0 }
 0x19f   : > { %v6069_v4 = vadd.f32 %v4478_v0, %v5945_v62  ;;  %v4500_v33 = vpop.f32.mrf.mxu1 }
 0x1a0   : > { %v6072_v5 = vadd.f32 %v4500_v33, %v5968_v20  ;;  %v1880_v24 = vpop.f32.mrf.mxu0 }
 0x1a1   : > { %v6075_v41 = vadd.f32 %v1880_v24, %v5953_v17  ;;  %v2142_v28 = vpop.f32.mrf.mxu1 }
 0x1a2   : > { %v6078_v9 = vadd.f32 %v2142_v28, %v5974_v7  ;;  %v4479_v23 = vpop.f32.mrf.mxu0 }
 0x1a3   : > { %v6081_v47 = vadd.f32 %v4479_v23, %v5960_v53  ;;  %v4501_v3 = vpop.f32.mrf.mxu1 }
 0x1a4   : > { %v6084_v62 = vadd.f32 %v4501_v3, %v5980_v8  ;;  %v1883_v51 = vpop.f32.mrf.mxu0 }
 0x1a5   : > { %v6087_v20 = vadd.f32 %v1883_v51, %v5965_v1  ;;  %v2145_v26 = vpop.f32.mrf.mxu1 }
 0x1a6   : > { %v6090_v17 = vadd.f32 %v2145_v26, %v5986_v6  ;;  %v4522_v49 = vpop.f32.mrf.mxu0 }
 0x1a7   : > { %v4504_v37 = vpop.f32.mrf.mxu1  ;;  %v6093_v7 = vadd.f32 %v4522_v49, %v5971_v59 }
 0x1a8   : > { %v6096_v53 = vadd.f32 %v4504_v37, %v5992_v12  ;;  %v2404_v14 = vpop.f32.mrf.mxu0 }
 0x1a9   : > { %v2158_v11 = vpop.f32.mrf.mxu1  ;;  %v6099_v8 = vadd.f32 %v2404_v14, %v5977_v46 }
 0x1aa   : > { %v6102_v1 = vadd.f32 %v2158_v11, %v5998_v25  ;;  %v4523_v15 = vpop.f32.mrf.mxu0 }
 0x1ab   : > { %v4505_v13 = vpop.f32.mrf.mxu1  ;;  %v6105_v6 = vadd.f32 %v4523_v15, %v5983_v50 }
 0x1ac   : > { %v6108_v16 = vadd.f32 %v4505_v13, %v6004_v39  ;;  %v2407_v59 = vpop.f32.mrf.mxu0 }
 0x1ad   : > { %v2161_v43 = vpop.f32.mrf.mxu1  ;;  %v6111_v12 = vadd.f32 %v2407_v59, %v5989_v2 }
 0x1ae   : > { %v6114_v32 = vadd.f32 %v2161_v43, %v6010_v27  ;;  %v4526_v46 = vpop.f32.mrf.mxu0 }
 0x1af   : > { %v4508_v34 = vpop.f32.mrf.mxu1  ;;  %v6117_v25 = vadd.f32 %v4526_v46, %v5995_v55 }
 0x1b0   : > { %v6120_v60 = vadd.f32 %v4508_v34, %v6016_v31  ;;  %v2420_v50 = vpop.f32.mrf.mxu0 }
 0x1b1   : > { %v2174_v58 = vpop.f32.mrf.mxu1  ;;  %v6123_v39 = vadd.f32 %v2420_v50, %v6001_v35 }
 0x1b2   : > { %v6126_v38 = vadd.f32 %v2174_v58, %v6022_v29  ;;  %v4527_v2 = vpop.f32.mrf.mxu0 }
 0x1b3   : > { %v4509_v57 = vpop.f32.mrf.mxu1  ;;  %v6129_v27 = vadd.f32 %v4527_v2, %v6007_v19 }
 0x1b4   : > { %v6132_v0 = vadd.f32 %v4509_v57, %v6028_v52  ;;  %v2423_v55 = vpop.f32.mrf.mxu0 }
 0x1b5   : > { %v2177_v33 = vpop.f32.mrf.mxu1  ;;  %v6135_v31 = vadd.f32 %v2423_v55, %v6013_v44  ;;  %v4721_v44 = vld [vmem:[%s6617_s5] sm:$0xff]  }
 0x1b6   : > { %v6138_v24 = vadd.f32 %v2177_v33, %v6037_v22  ;;  %v4530_v35 = vpop.f32.mrf.mxu0  ;;  %4635 = vmatpush3.bf16.msra.mxu1 %v4721_v44 }
 0x1b7   : > { %v4512_v28 = vpop.f32.mrf.mxu1  ;;  %v6141_v29 = vadd.f32 %v4530_v35, %v6019_v30  ;;  %4640 = vmatprep.subr.bf16.mxu1 %v6623_v42 }
 0x1b8   : > { %v6144_v23 = vadd.f32 %v4512_v28, %v6044_v18  ;;  %v2436_v19 = vpop.f32.mrf.mxu0 }
 0x1b9   : > { %v2190_v3 = vpop.f32.mrf.mxu1  ;;  %v6147_v52 = vadd.f32 %v2436_v19, %v6025_v36 }
 0x1ba   : > { %v6153_v22 = vadd.f32 %v2190_v3, %v6051_v61  ;;  %v4531_v51 = vpop.f32.mrf.mxu0 }
 0x1bb   : > { %v4513_v26 = vpop.f32.mrf.mxu1  ;;  %v6156_v30 = vadd.f32 %v4531_v51, %v6031_v56 }
 0x1bc   : > { %v6159_v18 = vadd.f32 %v4513_v26, %v6057_v54  ;;  %v2439_v49 = vpop.f32.mrf.mxu0 }
 0x1bd   : > { %v2193_v36 = vpop.f32.mrf.mxu1  ;;  %v6163_v37 = vadd.f32 %v2439_v49, %v6041_v40  ;;  %v4796_v49 = vmov 1  }
 0x1be   : > { %v6166_v14 = vadd.f32 %v2193_v36, %v6063_v63  ;;  %v4534_v61 = vpop.f32.mrf.mxu0  ;;  %4718 = vset.pattern.permute.xlu1 %v4796_v49  ;;  %4719 = vset.pattern.permute.xlu0 %v4796_v49  ;;  %v6229_v36 = vpop.permute.xlu0 %3352 }
 0x1bf   : > { %v4516_v11 = vpop.f32.mrf.mxu1  ;;  %v6169_v15 = vadd.f32 %v4534_v61, %v6048_v45 }
 0x1c0   : > { %v6172_v56 = vadd.f32 %v4516_v11, %v6069_v4  ;;  %v2452_v54 = vpop.f32.mrf.mxu0  ;;  %v4730_v11 = vld [vmem:[%s5484_s26] sm:$0x1]  ;;  %s4737_s26 = scalar_lea.vmem %s4736_s25, 32 }
 0x1c1   : > { %v2206_v13 = vpop.f32.mrf.mxu1  ;;  %v6175_v59 = vadd.f32 %v2452_v54, %v6054_v10  ;;  %3718 = vperm.xlu1 %4718, %v4730_v11   ;;  %p4739_p1 = scmp.lt.s32.totalorder %s4737_s26, %s4731_s18 }
 0x1c2   : > { %v6178_v43 = vadd.f32 %v2206_v13, %v6075_v41  ;;  %v4535_v40 = vpop.f32.mrf.mxu0  ;;  %v6237_v13 = vpop.permute.xlu1 %3362 }
 0x1c3   : > { %v4517_v46 = vpop.f32.mrf.mxu1  ;;  %v6181_v63 = vadd.f32 %v4535_v40, %v6060_v21  ;;  %p4740_p2 = por %p4739_p1, %p4738_p0 }
 0x1c4   : > { %v6184_v34 = vadd.f32 %v4517_v46, %v6081_v47  ;;  %v2455_v45 = vpop.f32.mrf.mxu0 }
 0x1c5   : > { %v2209_v50 = vpop.f32.mrf.mxu1  ;;  %v6187_v4 = vadd.f32 %v2455_v45, %v6066_v48  ;;  %p4741_p3 = pnand %p4740_p2, %p4734_p13 }
 0x1c6   : > { %v6190_v58 = vadd.f32 %v2209_v50, %v6087_v20  ;;  %v4538_v10 = vpop.f32.mrf.mxu0 }
 0x1c7   : > { %v6193_v41 = vadd.f32 %v4538_v10, %v6072_v5  ;;  %v6195_v2 = vpop.f32.mrf.mxu1  ;;  %v6249_v10 = vpop.permute.xlu0 %3357 }
 0x1c8   : > { %v2468_v57 = vpop.f32.mrf.mxu0 }
 0x1c9   : > { %v6198_v21 = vadd.f32 %v2468_v57, %v6078_v9  ;;  %v6200_v47 = vpop.f32.mrf.mxu1 }
 0x1ca   : > { %v4539_v55 = vpop.f32.mrf.mxu0 }
 0x1cb   : > { %v6203_v33 = vadd.f32 %v4539_v55, %v6084_v62  ;;  %v6205_v48 = vpop.f32.mrf.mxu1  ;;  %v6268_v11 = vpop.permute.xlu0 %3372 }
 0x1cc   : > { %v2471_v20 = vpop.f32.mrf.mxu0 }
 0x1cd   : > { %v6208_v35 = vadd.f32 %v2471_v20, %v6090_v17  ;;  %v6210_v5 = vpop.f32.mrf.mxu1 }
 0x1ce   : > { %v4542_v28 = vpop.f32.mrf.mxu0 }
 0x1cf   : > { %v6213_v19 = vadd.f32 %v4542_v28, %v6096_v53  ;;  %v6215_v9 = vpop.f32.mrf.mxu1  ;;  %v6256_v28 = vpop.permute.xlu1 %3367 }
 0x1d0   : > { %v2484_v3 = vpop.f32.mrf.mxu0 }
 0x1d1   : > { %v6218_v44 = vadd.f32 %v2484_v3, %v6102_v1  ;;  %v6220_v62 = vpop.f32.mrf.mxu1 }
 0x1d2   : > { %v4543_v51 = vpop.f32.mrf.mxu0 }
 0x1d3   : > { %6627 = vst [vmem:[#allocation5_spill] sm:$0xff] %v6218_v44  ;;  %v6225_v17 = vadd.f32 %v4543_v51, %v6108_v16  ;;  %v6227_v26 = vpop.f32.mrf.mxu1 }
 0x1d4   : > { %v2487_v53 = vpop.f32.mrf.mxu0 }
 0x1d5   : > { %6628 = vst [vmem:[#allocation6_spill] sm:$0xff] %v6225_v17  ;;  %v6232_v1 = vadd.f32 %v2487_v53, %v6114_v32  ;;  %v6234_v61 = vpop.f32.mrf.mxu1 }
 0x1d6   : > { %v4546_v54 = vpop.f32.mrf.mxu0 }
 0x1d7   : > { %6629 = vst [vmem:[#allocation7_spill] sm:$0xff] %v6232_v1  ;;  %v6240_v16 = vadd.f32 %v4546_v54, %v6120_v60  ;;  %v6242_v40 = vpop.f32.mrf.mxu1 }
 0x1d8   : > { %v2500_v46 = vpop.f32.mrf.mxu0 }
 0x1d9   : > { %6630 = vst [vmem:[#allocation8_spill] sm:$0xff] %v6240_v16  ;;  %v6245_v45 = vadd.f32 %v2500_v46, %v6126_v38  ;;  %v6247_v50 = vpop.f32.mrf.mxu1 }
 0x1da   : > { %v4547_v32 = vpop.f32.mrf.mxu0 }
 0x1db   : > { %6631 = vst [vmem:[#allocation9_spill] sm:$0xff] %v6245_v45  ;;  %v6252_v57 = vadd.f32 %v4547_v32, %v6132_v0  ;;  %v6254_v55 = vpop.f32.mrf.mxu1  ;;  %v6275_v32 = vpop.permute.xlu1 %3377 }
 0x1dc   : > { %v2503_v20 = vpop.f32.mrf.mxu0 }
 0x1dd   : > { %6632 = vst [vmem:[#allocation10_spill] sm:$0xff] %v6252_v57  ;;  %v6259_v60 = vadd.f32 %v2503_v20, %v6138_v24  ;;  %v6261_v3 = vpop.f32.mrf.mxu1 }
 0x1de   : > { %v4550_v38 = vpop.f32.mrf.mxu0 }
 0x1df   : > { %6633 = vst [vmem:[#allocation11_spill] sm:$0xff] %v6259_v60  ;;  %v6264_v51 = vadd.f32 %v4550_v38, %v6144_v23  ;;  %v6266_v53 = vpop.f32.mrf.mxu1  ;;  %v6287_v60 = vpop.permute.xlu0 %3382 }
 0x1e0   : > { %v2516_v49 = vpop.f32.mrf.mxu0  ;;  %v6294_v57 = vpop.permute.xlu1 %3387 }
 0x1e1   : > { %6634 = vst [vmem:[#allocation12_spill] sm:$0xff] %v6264_v51  ;;  %v6271_v0 = vadd.f32 %v2516_v49, %v6153_v22  ;;  %v6273_v54 = vpop.f32.mrf.mxu1 }
 0x1e2   : > { %v4551_v46 = vpop.f32.mrf.mxu0 }
 0x1e3   : > { %6635 = vst [vmem:[#allocation13_spill] sm:$0xff] %v6271_v0  ;;  %v6278_v24 = vadd.f32 %v4551_v46, %v6159_v18  ;;  %v6280_v20 = vpop.f32.mrf.mxu1  ;;  %v6306_v45 = vpop.permute.xlu0 %3392 }
 0x1e4   : > { %v2519_v23 = vpop.f32.mrf.mxu0 }
 0x1e5   : > { %6636 = vst [vmem:[#allocation14_spill] sm:$0xff] %v6278_v24  ;;  %v6283_v38 = vadd.f32 %v2519_v23, %v6166_v14  ;;  %v6285_v42 = vpop.f32.mrf.mxu1 }
 0x1e6   : > { %v4554_v51 = vpop.f32.mrf.mxu0 }
 0x1e7   : > { %6637 = vst [vmem:[#allocation15_spill] sm:$0xff] %v6283_v38  ;;  %v6290_v22 = vadd.f32 %v4554_v51, %v6172_v56  ;;  %v6292_v49 = vpop.f32.mrf.mxu1  ;;  %v2875_v56 = vadd.f32 %v6195_v2, %v6093_v7  ;;  %v2876_v7 = vadd.f32 %v6205_v48, %v6105_v6 }
 0x1e8   : > { %v2532_v0 = vpop.f32.mrf.mxu0 }
 0x1e9   : > { %6638 = vst [vmem:[#allocation16_spill] sm:$0xff] %v6290_v22  ;;  %v6297_v18 = vadd.f32 %v2532_v0, %v6178_v43  ;;  %v6299_v46 = vpop.f32.mrf.mxu1  ;;  %v6313_v43 = vpop.permute.xlu1 %3397  ;;  %v2873_v0 = vadd.f32 %v6200_v47, %v6099_v8 }
 0x1ea   : > { %v4555_v14 = vpop.f32.mrf.mxu0 }
 0x1eb   : > { %6639 = vst [vmem:[#allocation17_spill] sm:$0xff] %v6297_v18  ;;  %v6302_v23 = vadd.f32 %v4555_v14, %v6184_v34  ;;  %v6304_v38 = vpop.f32.mrf.mxu1  ;;  %v6322_v14 = vld [vmem:[%s6614_s2] ss:$0 sm:$0xff] }
 0x1ec   : > { %v2535_v24 = vpop.f32.mrf.mxu0 }
 0x1ed   : > { %6640 = vst [vmem:[#allocation18_spill] sm:$0xff] %v6302_v23  ;;  %v6311_v51 = vadd.f32 %v2535_v24, %v6190_v58  ;;  %v6317_v34 = vpop.f32.mrf.mxu1  ;;  %v6326_v24 = vpop.permute.xlu0 %3402 }
 0x1ee   : > { %v4598_v22 = vpop.f32.mrf.mxu0  ;;  %v6334_v1 = vpop.permute.xlu1 %3407 }
 0x1ef   : > { %6641 = vst [vmem:[#allocation19_spill] sm:$0xff] %v6311_v51  ;;  %v3201_v18 = vadd.f32 %v4598_v22, %v2875_v56  ;;  %v2874_v51 = vadd.f32 %v6210_v5, %v6111_v12  ;;  %v6332_v56 = vpop.f32.mrf.mxu1  ;;  %v2877_v12 = vadd.f32 %v6220_v62, %v6123_v39  ;;  %v2878_v39 = vadd.f32 %v6234_v61, %v6135_v31 }
 0x1f0   : > { %v3056_v23 = vpop.f32.mrf.mxu0  ;;  %6642 = vst [vmem:[#allocation20_spill] sm:$0xff] %v6332_v56 }
 0x1f1   : > { %v3199_v58 = vadd.f32 %v3056_v23, %v2873_v0  ;;  %v3244_v8 = vadd.f32 %v6322_v14, %v3201_v18  ;;  %v2879_v23 = vadd.f32 %v6215_v9, %v6117_v25  ;;  %v6345_v56 = vpop.permute.xlu0 %3412 }
 0x1f2   : > { %v4599_v2 = vpop.f32.mrf.mxu0 }
 0x1f3   : > { %v3242_v47 = vadd.f32 %v6322_v14, %v3199_v58  ;;  %v3202_v22 = vadd.f32 %v4599_v2, %v2876_v7  ;;  %v3280_v5 = vmax.f32 %v3244_v8, 0.0  ;;  %v6342_v7 = vpop.f32.mrf.mxu1  ;;  %v6352_v8 = vpop.permute.xlu1 %3417 }
 0x1f4   : > { %v3059_v16 = vpop.f32.mrf.mxu0 }
 0x1f5   : > { %v3278_v17 = vmax.f32 %v3242_v47, 0.0  ;;  %v3245_v6 = vadd.f32 %v6322_v14, %v3202_v22  ;;  %v3200_v48 = vadd.f32 %v3059_v16, %v2874_v51  ;;  %v2880_v16 = vadd.f32 %v6227_v26, %v6129_v27 }
 0x1f6   : > { %v4602_v0 = vpop.f32.mrf.mxu0  ;;  %v2883_v27 = vadd.f32 %v6242_v40, %v6141_v29 }
 0x1f7   : > { %v3243_v18 = vadd.f32 %v6322_v14, %v3200_v48  ;;  %v3530_v58 = vmul.f32 %v6229_v36, %v3278_v17  ;;  %v3281_v2 = vmax.f32 %v3245_v6, 0.0  ;;  %v3205_v44 = vadd.f32 %v4602_v0, %v2879_v23  ;;  %v6360_v48 = vpop.f32.mrf.mxu1 }
 0x1f8   : > { %v3072_v47 = vpop.f32.mrf.mxu0  ;;  %v3532_v17 = vmul.f32 %v6237_v13, %v3280_v5 }
 0x1f9   : > { %v3279_v25 = vmax.f32 %v3243_v18, 0.0  ;;  %v3203_v9 = vadd.f32 %v3072_v47, %v2877_v12  ;;  %v3248_v62 = vadd.f32 %v6322_v14, %v3205_v44  ;;  %v3567_v26 = vsel %vm3566_vm3, %v3530_v58, 0.0  ;;  %v6365_v18 = vpop.permute.xlu0 %3422 }
 0x1fa   : > { %v4603_v51 = vpop.f32.mrf.mxu0  ;;  %v3533_v31 = vmul.f32 %v6256_v28, %v3281_v2  ;;  %v3570_v29 = vsel %vm3566_vm3, %v3532_v17, 0.0  ;;  %v2881_v28 = vadd.f32 %v6247_v50, %v6147_v52  ;;  %v6372_v2 = vpop.f32.mrf.mxu1 }
 0x1fb   : > { %v3531_v36 = vmul.f32 %v6249_v10, %v3279_v25  ;;  %v3246_v22 = vadd.f32 %v6322_v14, %v3203_v9  ;;  %v3206_v6 = vadd.f32 %v4603_v51, %v2880_v16  ;;  %v3284_v12 = vmax.f32 %v3248_v62, 0.0  ;;  %v6374_v9 = vpop.permute.xlu1 %3427 }
 0x1fc   : > { %v3075_v44 = vpop.f32.mrf.mxu0  ;;  %v3572_v62 = vsel %vm3566_vm3, %v3533_v31, 0.0 }
 0x1fd   : > { %v3568_v61 = vsel %vm3566_vm3, %v3531_v36, 0.0  ;;  %v3282_v23 = vmax.f32 %v3246_v22, 0.0  ;;  %v3249_v13 = vadd.f32 %v6322_v14, %v3206_v6  ;;  %v3204_v0 = vadd.f32 %v3075_v44, %v2878_v39 }
 0x1fe   : > { %v3569_v10 = vadd.f32 %v3568_v61, %v3567_v26  ;;  %v4606_v5 = vpop.f32.mrf.mxu0  ;;  %v2884_v39 = vadd.f32 %v6254_v55, %v6156_v30  ;;  %v3536_v36 = vmul.f32 %v6287_v60, %v3284_v12  ;;  %v2887_v30 = vadd.f32 %v6266_v53, %v6169_v15  ;;  %v6387_v55 = vpop.f32.mrf.mxu1 }
 0x1ff   : > { %v3534_v40 = vmul.f32 %v6268_v11, %v3282_v23  ;;  %v3247_v58 = vadd.f32 %v6322_v14, %v3204_v0  ;;  %v3209_v47 = vadd.f32 %v4606_v5, %v2883_v27  ;;  %v3285_v51 = vmax.f32 %v3249_v13, 0.0  ;;  %v6390_v60 = vpop.permute.xlu0 %3432  ;;  %v6397_v12 = vpop.permute.xlu1 %3437 }
 0x200   : > { %v3571_v16 = vadd.f32 %v3570_v29, %v3569_v10  ;;  %v3088_v25 = vpop.f32.mrf.mxu0  ;;  %v2882_v11 = vadd.f32 %v6261_v3, %v6163_v37  ;;  %v2885_v0 = vadd.f32 %v6273_v54, %v6175_v59  ;;  %v3578_v5 = vsel %vm3566_vm3, %v3536_v36, 0.0 }
 0x201   : > { %v3283_v17 = vmax.f32 %v3247_v58, 0.0  ;;  %v3207_v52 = vadd.f32 %v3088_v25, %v2881_v28  ;;  %v3574_v6 = vsel %vm3566_vm3, %v3534_v40, 0.0  ;;  %v3252_v26 = vadd.f32 %v6322_v14, %v3209_v47 }
 0x202   : > { %v3573_v22 = vadd.f32 %v3572_v62, %v3571_v16  ;;  %v4607_v50 = vpop.f32.mrf.mxu0  ;;  %v3537_v61 = vmul.f32 %v6294_v57, %v3285_v51  ;;  %v6401_v57 = vpop.f32.mrf.mxu1  ;;  %v2888_v62 = vadd.f32 %v6280_v20, %v6181_v63  ;;  %v2886_v51 = vadd.f32 %v6285_v42, %v6187_v4 }
 0x203   : > { %v3535_v27 = vmul.f32 %v6275_v32, %v3283_v17  ;;  %v3210_v44 = vadd.f32 %v4607_v50, %v2884_v39  ;;  %v3250_v37 = vadd.f32 %v6322_v14, %v3207_v52  ;;  %v3288_v29 = vmax.f32 %v3252_v26, 0.0  ;;  %v6420_v26 = vpop.permute.xlu1 %3447 }
 0x204   : > { %v3575_v31 = vadd.f32 %v3574_v6, %v3573_v22  ;;  %v3091_v3 = vpop.f32.mrf.mxu0  ;;  %v3580_v25 = vsel %vm3566_vm3, %v3537_v61, 0.0  ;;  %v6410_v22 = vpop.permute.xlu0 %3442  ;;  %v2891_v63 = vadd.f32 %v6292_v49, %v6193_v41 }
 0x205   : > { %v3576_v23 = vsel %vm3566_vm3, %v3535_v27, 0.0  ;;  %v3253_v32 = vadd.f32 %v6322_v14, %v3210_v44  ;;  %v3208_v13 = vadd.f32 %v3091_v3, %v2882_v11  ;;  %v3286_v15 = vmax.f32 %v3250_v37, 0.0  ;;  %v6418_v20 = vpop.f32.mrf.mxu1 }
 0x206   : > { %v3577_v10 = vadd.f32 %v3576_v23, %v3575_v31  ;;  %v4610_v53 = vpop.f32.mrf.mxu0 }
 0x207   : > { %v3251_v40 = vadd.f32 %v6322_v14, %v3208_v13  ;;  %v3213_v58 = vadd.f32 %v4610_v53, %v2887_v30  ;;  %v3538_v28 = vmul.f32 %v6306_v45, %v3286_v15  ;;  %v3289_v59 = vmax.f32 %v3253_v32, 0.0 }
 0x208   : > { %v3579_v47 = vadd.f32 %v3578_v5, %v3577_v10  ;;  %v3104_v16 = vpop.f32.mrf.mxu0  ;;  %v3540_v45 = vmul.f32 %v6326_v24, %v3288_v29 }
 0x209   : > { %v3287_v54 = vmax.f32 %v3251_v40, 0.0  ;;  %v3211_v39 = vadd.f32 %v3104_v16, %v2885_v0  ;;  %v3256_v11 = vadd.f32 %v6322_v14, %v3213_v58  ;;  %v3582_v52 = vsel %vm3566_vm3, %v3538_v28, 0.0  ;;  %v6432_v0 = vpop.f32.mrf.mxu1  ;;  %v6439_v28 = vpop.permute.xlu1 %3457 }
 0x20a   : > { %v3581_v17 = vadd.f32 %v3580_v25, %v3579_v47  ;;  %v4611_v36 = vpop.f32.mrf.mxu0  ;;  %v3541_v44 = vmul.f32 %v6334_v1, %v3289_v59  ;;  %v3586_v61 = vsel %vm3566_vm3, %v3540_v45, 0.0  ;;  %v2892_v1 = vadd.f32 %v6304_v38, %v6203_v33 }
 0x20b   : > { %v3539_v50 = vmul.f32 %v6313_v43, %v3287_v54  ;;  %v3254_v6 = vadd.f32 %v6322_v14, %v3211_v39  ;;  %v3214_v4 = vadd.f32 %v4611_v36, %v2888_v62  ;;  %v2889_v43 = vadd.f32 %v6299_v46, %v6198_v21  ;;  %v6434_v21 = vpop.permute.xlu0 %3452  ;;  %v6446_v54 = vpop.f32.mrf.mxu1 }
 0x20c   : > { %v3583_v42 = vadd.f32 %v3582_v52, %v3581_v17  ;;  %v3107_v27 = vpop.f32.mrf.mxu0  ;;  %v3292_v3 = vmax.f32 %v3256_v11, 0.0  ;;  %v3588_v46 = vsel %vm3566_vm3, %v3541_v44, 0.0  ;;  %v2890_v59 = vadd.f32 %v6317_v34, %v6208_v35  ;;  %v6643_v11 = vld [vmem:[#allocation20_spill] sm:$0xff] }
 0x20d   : > { %v3584_v24 = vsel %vm3566_vm3, %v3539_v50, 0.0  ;;  %v3290_v30 = vmax.f32 %v3254_v6, 0.0  ;;  %v3212_v31 = vadd.f32 %v3107_v27, %v2886_v51  ;;  %v3257_v41 = vadd.f32 %v6322_v14, %v3214_v4  ;;  %v6457_v4 = vpop.f32.mrf.mxu1 }
 0x20e   : > { %v3585_v37 = vadd.f32 %v3584_v24, %v3583_v42  ;;  %v4614_v49 = vpop.f32.mrf.mxu0  ;;  %v3544_v40 = vmul.f32 %v6365_v18, %v3292_v3 }
 0x20f   : > { %v3542_v23 = vmul.f32 %v6345_v56, %v3290_v30  ;;  %v3255_v32 = vadd.f32 %v6322_v14, %v3212_v31  ;;  %v3217_v13 = vadd.f32 %v4614_v49, %v2891_v63  ;;  %v3293_v53 = vmax.f32 %v3257_v41, 0.0  ;;  %v3463_v6 = vpop.permute.xlu0 %3462  ;;  %v6644_v63 = vld [vmem:[#allocation5_spill] sm:$0xff]  ;;  %v3468_v30 = vpop.permute.xlu1 %3467  ;;  %v6645_v31 = vld [vmem:[#allocation6_spill] sm:$0xff] }
 0x210   : > { %v3587_v10 = vadd.f32 %v3586_v61, %v3585_v37  ;;  %v3120_v15 = vpop.f32.mrf.mxu0  ;;  %v2893_v35 = vadd.f32 %v6342_v7, %v6644_v63  ;;  %v3594_v34 = vsel %vm3566_vm3, %v3544_v40, 0.0  ;;  %v6646_v7 = vld [vmem:[#allocation7_spill] sm:$0xff] }
 0x211   : > { %v3291_v5 = vmax.f32 %v3255_v32, 0.0  ;;  %v3215_v29 = vadd.f32 %v3120_v15, %v2889_v43  ;;  %v3590_v58 = vsel %vm3566_vm3, %v3542_v23, 0.0  ;;  %v3260_v38 = vadd.f32 %v6322_v14, %v3217_v13  ;;  %v4589_v15 = vpop.f32.mrf.mxu1 }
 0x212   : > { %v3589_v56 = vadd.f32 %v3588_v46, %v3587_v10  ;;  %v4615_v47 = vpop.f32.mrf.mxu0  ;;  %v3545_v62 = vmul.f32 %v6374_v9, %v3293_v53  ;;  %v2896_v43 = vadd.f32 %v6360_v48, %v6645_v31  ;;  %v2894_v41 = vadd.f32 %v6372_v2, %v6646_v7 }
 0x213   : > { %v3543_v33 = vmul.f32 %v6352_v8, %v3291_v5  ;;  %v3258_v16 = vadd.f32 %v6322_v14, %v3215_v29  ;;  %v3218_v25 = vadd.f32 %v4615_v47, %v2892_v1  ;;  %v2895_v8 = vadd.f32 %v6643_v11, %v6213_v19  ;;  %v3473_v29 = vpop.permute.xlu0 %3472  ;;  %v6649_v11 = vld [vmem:[#allocation10_spill] sm:$0xff] }
 0x214   : > { %v3591_v39 = vadd.f32 %v3590_v58, %v3589_v56  ;;  %v3123_v18 = vpop.f32.mrf.mxu0  ;;  %v3296_v42 = vmax.f32 %v3260_v38, 0.0  ;;  %v3596_v37 = vsel %vm3566_vm3, %v3545_v62, 0.0  ;;  %v6647_v56 = vld [vmem:[#allocation8_spill] sm:$0xff] }
 0x215   : > { %v3592_v51 = vsel %vm3566_vm3, %v3543_v33, 0.0  ;;  %v3294_v17 = vmax.f32 %v3258_v16, 0.0  ;;  %v3261_v45 = vadd.f32 %v6322_v14, %v3218_v25  ;;  %v3216_v52 = vadd.f32 %v3123_v18, %v2890_v59  ;;  %v3478_v16 = vpop.permute.xlu1 %3477  ;;  %v6648_v25 = vld [vmem:[#allocation9_spill] sm:$0xff]  ;;  %v2845_v18 = vpop.f32.mrf.mxu1 }
 0x216   : > { %v3593_v36 = vadd.f32 %v3592_v51, %v3591_v39  ;;  %v4618_v50 = vpop.f32.mrf.mxu0  ;;  %v3548_v32 = vmul.f32 %v6410_v22, %v3296_v42  ;;  %v2899_v58 = vadd.f32 %v6387_v55, %v6647_v56 }
 0x217   : > { %v3546_v9 = vmul.f32 %v6390_v60, %v3294_v17  ;;  %v3259_v44 = vadd.f32 %v6322_v14, %v3216_v52  ;;  %v3221_v19 = vadd.f32 %v4618_v50, %v2895_v8  ;;  %v3297_v61 = vmax.f32 %v3261_v45, 0.0 }
 0x218   : > { %v3595_v27 = vadd.f32 %v3594_v34, %v3593_v36  ;;  %v3136_v24 = vpop.f32.mrf.mxu0  ;;  %v3602_v59 = vsel %vm3566_vm3, %v3548_v32, 0.0  ;;  %v2900_v8 = vadd.f32 %v6418_v20, %v6649_v11  ;;  %v6650_v34 = vld [vmem:[#allocation11_spill] sm:$0xff]  ;;  %v6652_v32 = vld [vmem:[#allocation13_spill] sm:$0xff] }
 0x219   : > { %v3219_v3 = vadd.f32 %v3136_v24, %v2893_v35  ;;  %v3295_v60 = vmax.f32 %v3259_v44, 0.0  ;;  %v3598_v13 = vsel %vm3566_vm3, %v3546_v9, 0.0  ;;  %v3264_v53 = vadd.f32 %v6322_v14, %v3221_v19  ;;  %v3483_v35 = vpop.permute.xlu0 %3482  ;;  %v4592_v44 = vpop.f32.mrf.mxu1 }
 0x21a   : > { %v3597_v49 = vadd.f32 %v3596_v37, %v3595_v27  ;;  %v4619_v23 = vpop.f32.mrf.mxu0  ;;  %v3549_v22 = vmul.f32 %v6420_v26, %v3297_v61  ;;  %v2898_v42 = vadd.f32 %v6432_v0, %v6650_v34  ;;  %v3488_v37 = vpop.permute.xlu1 %3487 }
 0x21b   : > { %v3262_v1 = vadd.f32 %v6322_v14, %v3219_v3  ;;  %v3222_v10 = vadd.f32 %v4619_v23, %v2896_v43  ;;  %v3547_v48 = vmul.f32 %v6397_v12, %v3295_v60  ;;  %v2897_v12 = vadd.f32 %v6401_v57, %v6648_v25 }
 0x21c   : > { %v3599_v46 = vadd.f32 %v3598_v13, %v3597_v49  ;;  %v3139_v5 = vpop.f32.mrf.mxu0  ;;  %v3300_v62 = vmax.f32 %v3264_v53, 0.0  ;;  %v3604_v52 = vsel %vm3566_vm3, %v3549_v22, 0.0  ;;  %v6651_v49 = vld [vmem:[#allocation12_spill] sm:$0xff]  ;;  %v2901_v13 = vadd.f32 %v6457_v4, %v6652_v32  ;;  %v6654_v22 = vld [vmem:[#allocation15_spill] sm:$0xff] }
 0x21d   : > { %v3298_v2 = vmax.f32 %v3262_v1, 0.0  ;;  %v3220_v40 = vadd.f32 %v3139_v5, %v2894_v41  ;;  %v3600_v47 = vsel %vm3566_vm3, %v3547_v48, 0.0  ;;  %v3265_v33 = vadd.f32 %v6322_v14, %v3222_v10  ;;  %v2858_v10 = vpop.f32.mrf.mxu1 }
 0x21e   : > { %v4622_v38 = vpop.f32.mrf.mxu0  ;;  %v3601_v39 = vadd.f32 %v3600_v47, %v3599_v46  ;;  %v3552_v19 = vmul.f32 %v3463_v6, %v3300_v62  ;;  %v2903_v0 = vadd.f32 %v6446_v54, %v6651_v49  ;;  %v3493_v54 = vpop.permute.xlu0 %3492  ;;  %v2902_v47 = vadd.f32 %v2845_v18, %v6654_v22 }
 0x21f   : > { %v3550_v51 = vmul.f32 %v6434_v21, %v3298_v2  ;;  %v3263_v55 = vadd.f32 %v6322_v14, %v3220_v40  ;;  %v3225_v17 = vadd.f32 %v4622_v38, %v2899_v58  ;;  %v3301_v50 = vmax.f32 %v3265_v33, 0.0 }
 0x220   : > { %v3152_v26 = vpop.f32.mrf.mxu0  ;;  %v3603_v36 = vadd.f32 %v3602_v59, %v3601_v39  ;;  %v3610_v46 = vsel %vm3566_vm3, %v3552_v19, 0.0 }
 0x221   : > { %v3223_v45 = vadd.f32 %v3152_v26, %v2897_v12  ;;  %v3299_v57 = vmax.f32 %v3263_v55, 0.0  ;;  %v3606_v24 = vsel %vm3566_vm3, %v3550_v51, 0.0  ;;  %v3268_v31 = vadd.f32 %v6322_v14, %v3225_v17  ;;  %v3498_v12 = vpop.permute.xlu1 %3497  ;;  %v4593_v51 = vpop.f32.mrf.mxu1 }
 0x222   : > { %v4623_v63 = vpop.f32.mrf.mxu0  ;;  %v3605_v9 = vadd.f32 %v3604_v52, %v3603_v36  ;;  %v3553_v61 = vmul.f32 %v3468_v30, %v3301_v50  ;;  %v6653_v30 = vld [vmem:[#allocation14_spill] sm:$0xff]  ;;  %v6655_v36 = vld [vmem:[#allocation16_spill] sm:$0xff] }
 0x223   : > { %v3266_v21 = vadd.f32 %v6322_v14, %v3223_v45  ;;  %v3226_v27 = vadd.f32 %v4623_v63, %v2900_v8  ;;  %v3551_v20 = vmul.f32 %v6439_v28, %v3299_v57  ;;  %v3304_v48 = vmax.f32 %v3268_v31, 0.0  ;;  %v3503_v63 = vpop.permute.xlu0 %3502 }
 0x224   : > { %v3155_v43 = vpop.f32.mrf.mxu0  ;;  %v3607_v3 = vadd.f32 %v3606_v24, %v3605_v9  ;;  %v2904_v40 = vadd.f32 %v4589_v15, %v6653_v30  ;;  %v3612_v33 = vsel %vm3566_vm3, %v3553_v61, 0.0  ;;  %v2907_v45 = vadd.f32 %v4592_v44, %v6655_v36  ;;  %v6656_v9 = vld [vmem:[#allocation17_spill] sm:$0xff] }
 0x225   : > { %v3302_v7 = vmax.f32 %v3266_v21, 0.0  ;;  %v3224_v41 = vadd.f32 %v3155_v43, %v2898_v42  ;;  %v3608_v60 = vsel %vm3566_vm3, %v3551_v20, 0.0  ;;  %v3269_v23 = vadd.f32 %v6322_v14, %v3226_v27  ;;  %v2861_v27 = vpop.f32.mrf.mxu1  ;;  %v3508_v43 = vpop.permute.xlu1 %3507 }
 0x226   : > { %v4626_v6 = vpop.f32.mrf.mxu0  ;;  %v3609_v28 = vadd.f32 %v3608_v60, %v3607_v3  ;;  %v3556_v55 = vmul.f32 %v3483_v35, %v3304_v48  ;;  %v2905_v21 = vadd.f32 %v2858_v10, %v6656_v9  ;;  %v6657_v3 = vld [vmem:[#allocation18_spill] sm:$0xff]  ;;  %v6658_v60 = vld [vmem:[#allocation19_spill] sm:$0xff] }
 0x227   : > { %v3267_v1 = vadd.f32 %v6322_v14, %v3224_v41  ;;  %v3554_v53 = vmul.f32 %v3473_v29, %v3302_v7  ;;  %v3229_v5 = vadd.f32 %v4626_v6, %v2903_v0  ;;  %v3305_v4 = vmax.f32 %v3269_v23, 0.0 }
 0x228   : > { %v3168_v2 = vpop.f32.mrf.mxu0  ;;  %v3611_v56 = vadd.f32 %v3610_v46, %v3609_v28  ;;  %v3618_v19 = vsel %vm3566_vm3, %v3556_v55, 0.0  ;;  %v2908_v7 = vadd.f32 %v4593_v51, %v6657_v3  ;;  %v2906_v23 = vadd.f32 %v2861_v27, %v6658_v60 }
 0x229   : > { %v3303_v58 = vmax.f32 %v3267_v1, 0.0  ;;  %v3227_v38 = vadd.f32 %v3168_v2, %v2901_v13  ;;  %v3272_v62 = vadd.f32 %v6322_v14, %v3229_v5  ;;  %v3614_v17 = vsel %vm3566_vm3, %v3554_v53, 0.0  ;;  %v3513_v53 = vpop.permute.xlu0 %3512 }
 0x22a   : > { %v4627_v25 = vpop.f32.mrf.mxu0  ;;  %v3613_v59 = vadd.f32 %v3612_v33, %v3611_v56  ;;  %v3557_v52 = vmul.f32 %v3488_v37, %v3305_v4  ;;  %v6659_v27 = vmov 0.0  }
 0x22b   : > { %v3555_v39 = vmul.f32 %v3478_v16, %v3303_v58  ;;  %v3230_v29 = vadd.f32 %v4627_v25, %v2904_v40  ;;  %v3270_v15 = vadd.f32 %v6322_v14, %v3227_v38  ;;  %v3308_v42 = vmax.f32 %v3272_v62, 0.0  ;;  %v3518_v58 = vpop.permute.xlu1 %3517 }
 0x22c   : > { %v3171_v26 = vpop.f32.mrf.mxu0  ;;  %v3615_v11 = vadd.f32 %v3614_v17, %v3613_v59  ;;  %v3620_v41 = vsel %vm3566_vm3, %v3557_v52, 0.0 }
 0x22d   : > { %v3616_v18 = vsel %vm3566_vm3, %v3555_v39, 0.0  ;;  %v3228_v8 = vadd.f32 %v3171_v26, %v2902_v47  ;;  %v3306_v50 = vmax.f32 %v3270_v15, 0.0  ;;  %v3273_v16 = vadd.f32 %v6322_v14, %v3230_v29  ;;  %v3523_v62 = vpop.permute.xlu0 %3522 }
 0x22e   : > { %v4630_v57 = vpop.f32.mrf.mxu0  ;;  %v3617_v34 = vadd.f32 %v3616_v18, %v3615_v11  ;;  %v3560_v6 = vmul.f32 %v3503_v63, %v3308_v42 }
 0x22f   : > { %v3271_v35 = vadd.f32 %v6322_v14, %v3228_v8  ;;  %v3558_v24 = vmul.f32 %v3493_v54, %v3306_v50  ;;  %v3233_v20 = vadd.f32 %v4630_v57, %v2907_v45  ;;  %v3309_v49 = vmax.f32 %v3273_v16, 0.0  ;;  %v3528_v15 = vpop.permute.xlu1 %3527 }
 0x230   : > { %v3184_v31 = vpop.f32.mrf.mxu0  ;;  %v3619_v44 = vadd.f32 %v3618_v19, %v3617_v34  ;;  %v3626_v33 = vsel %vm3566_vm3, %v3560_v6, 0.0  ;;  %v4724_v19 = vld [vmem:[%s6620_s8 + $0x28] sm:$0xff]  }
 0x231   : > { %v3307_v37 = vmax.f32 %v3271_v35, 0.0  ;;  %v3231_v0 = vadd.f32 %v3184_v31, %v2905_v21  ;;  %v3622_v28 = vsel %vm3566_vm3, %v3558_v24, 0.0  ;;  %v3276_v1 = vadd.f32 %v6322_v14, %v3233_v20  ;;  %v4722_v35 = vld [vmem:[%s6620_s8 + $0x38] sm:$0xff]   ;;  %v4723_v21 = vld [vmem:[%s6620_s8 + $0x30] sm:$0xff]   ;;  %v4725_v24 = vld [vmem:[%s6620_s8 + $0x20] sm:$0xff]  }
 0x232   : > { %v4631_v61 = vpop.f32.mrf.mxu0  ;;  %v3621_v32 = vadd.f32 %v3620_v41, %v3619_v44  ;;  %v3561_v30 = vmul.f32 %v3508_v43, %v3309_v49  ;;  %v4726_v20 = vld [vmem:[%s6620_s8 + $0x18] sm:$0xff]   ;;  %v4727_v31 = vld [vmem:[%s6620_s8 + $0x10] sm:$0xff]   ;;  %v4728_v43 = vld [vmem:[%s6620_s8 + $0x8] sm:$0xff]  }
 0x233   : > { %v3559_v13 = vmul.f32 %v3498_v12, %v3307_v37  ;;  %v3274_v10 = vadd.f32 %v6322_v14, %v3231_v0  ;;  %v3234_v46 = vadd.f32 %v4631_v61, %v2908_v7  ;;  %v3312_v4 = vmax.f32 %v3276_v1, 0.0  ;;  %v4729_v44 = vld [vmem:[%s6620_s8] sm:$0xff]   ;;  %v3655_v0 = vpop.permute.xlu0 %3654 }
 0x234   : > { %v3187_v48 = vpop.f32.mrf.mxu0  ;;  %v3623_v5 = vadd.f32 %v3622_v28, %v3621_v32  ;;  %v3628_v59 = vsel %vm3566_vm3, %v3561_v30, 0.0  ;;  %v3657_v37 = vlaneseq  ;;  %v3651_v61 = vld [vmem:[%s6618_s6] sm:$0x3] }
 0x235   : > { %v3624_v2 = vsel %vm3566_vm3, %v3559_v13, 0.0  ;;  %v3232_v54 = vadd.f32 %v3187_v48, %v2906_v23  ;;  %v3310_v40 = vmax.f32 %v3274_v10, 0.0  ;;  %v3277_v56 = vadd.f32 %v6322_v14, %v3234_v46  ;;  %v3730_v1 = vld [vmem:[%s6619_s7] sm:$0x1] }
 0x236   : > { %v3625_v22 = vadd.f32 %v3624_v2, %v3623_v5  ;;  %v3564_v55 = vmul.f32 %v3523_v62, %v3312_v4  ;;  %v3658_v3 = vshrl.u32 %v3657_v37, 7  ;;  %v3750_v30 = vld [vmem:[%s6621_s9] sm:$0x1] }
 0x237   : > { %v3275_v47 = vadd.f32 %v6322_v14, %v3232_v54  ;;  %v3562_v38 = vmul.f32 %v3513_v53, %v3310_v40  ;;  %v3313_v39 = vmax.f32 %v3277_v56, 0.0 }
 0x238   : > { %v3627_v25 = vadd.f32 %v3626_v33, %v3625_v22  ;;  %v3634_v8 = vsel %vm3566_vm3, %v3564_v55, 0.0  ;;  %v3659_v41 = vsub.s32 0, %v3658_v3 }
 0x239   : > { %v3311_v12 = vmax.f32 %v3275_v47, 0.0  ;;  %v3630_v17 = vsel %vm3566_vm3, %v3562_v38, 0.0  ;;  %v3565_v14 = vmul.f32 %v3528_v15, %v3313_v39 }
 0x23a   : > { %v3629_v29 = vadd.f32 %v3628_v59, %v3627_v25  ;;  %v3660_v60 = vrot.slane %v3655_v0, %v3659_v41 }
 0x23b   : > { %v3563_v51 = vmul.f32 %v3518_v58, %v3311_v12  ;;  %v3637_v45 = vsel %vm3636_vm4, %v3565_v14, 0.0 }
 0x23c   : > { %v3631_v26 = vadd.f32 %v3630_v17, %v3629_v29  ;;  %v3719_v7 = vpop.permute.xlu1 %3718  ;;  %v3661_v32 = vmul.f32 %v3660_v60, %v3651_v61 }
 0x23d   : > { %v3632_v11 = vsel %vm3566_vm3, %v3563_v51, 0.0  ;;  %v3724_v49 = vrot.slane %v3719_v7, %v3659_v41 }
 0x23e   : > { %v3633_v18 = vadd.f32 %v3632_v11, %v3631_v26 }
 0x23f   : > { %v3725_v23 = vmul.f32 %v3724_v49, %v3651_v61 }
 0x240   : > { %v3635_v36 = vadd.f32 %v3634_v8, %v3633_v18 }
 0x241   : > { %v3727_v6 = vrot.slane %v3725_v23, 1 }
 0x242   : > { %v3638_v52 = vadd.f32 %v3637_v45, %v3635_v36 }
 0x244   : > { %v3639_v50 = vrot.slane %v3638_v52, 4 }
 0x246   : > { %v3640_v16 = vadd.f32 %v3639_v50, %v3638_v52 }
 0x248   : > { %v3641_v57 = vrot.slane %v3640_v16, 2 }
 0x24a   : > { %v3642_v63 = vadd.f32 %v3641_v57, %v3640_v16 }
 0x24c   : > { %v3643_v34 = vrot.slane %v3642_v63, 1 }
 0x24e   : > { %v3644_v42 = vadd.f32 %v3643_v34, %v3642_v63 }
 0x250   : > { %v3645_v9 = vpack.c.bf16 %v3644_v42, %v3644_v42 }
 0x252   : > { %4637 = vmatmul.mubr.msk.bf16.vlgmr.msra.gmra.mxu1 %vm3566_vm3, %v3645_v9 }
 0x253   : > { %4641 = vmatpush3.bf16.msra.mxu1 %v4722_v35  ;;  %4656 = vmatprep.mubr.msk.bf16.mxu1 %vm4795_vm2, %v6659_v27 }
 0x254   : > { %4642 = vmatprep.subr.bf16.mxu1 %v6659_v27 }
 0x257   : > { %4643 = vmatpush3.bf16.msra.mxu1 %v4723_v21 }
 0x258   : > { %4644 = vmatprep.subr.bf16.mxu1 %v6659_v27 }
 0x25b   : > { %4645 = vmatpush3.bf16.msra.mxu1 %v4724_v19 }
 0x25c   : > { %4646 = vmatprep.subr.bf16.mxu1 %v6659_v27 }
 0x25f   : > { %4647 = vmatpush3.bf16.msra.mxu1 %v4725_v24 }
 0x260   : > { %4648 = vmatprep.subr.bf16.mxu1 %v6659_v27 }
 0x263   : > { %4649 = vmatpush3.bf16.msra.mxu1 %v4726_v20 }
 0x264   : > { %4650 = vmatprep.subr.bf16.mxu1 %v6659_v27 }
 0x267   : > { %4651 = vmatpush3.bf16.msra.mxu1 %v4727_v31 }
 0x268   : > { %4652 = vmatprep.subr.bf16.mxu1 %v6659_v27 }
 0x26b   : > { %4653 = vmatpush3.bf16.msra.mxu1 %v4728_v43 }
 0x26c   : > { %4654 = vmatprep.subr.bf16.mxu1 %v6659_v27 }
 0x26f   : > { %4655 = vmatpush3.bf16.msra.mxu1 %v4729_v44 }
 0x312   : > { %v3711_v13 = vpop.f32.mrf.mxu1 }
 0x313   : > { %v3712_v28 = vadd.f32 %v3711_v13, %v3661_v32 }
 0x314   : > { %v4638_v10 = vpop.f32.mrf.mxu1 }
 0x315   : > { %v3729_v46 = vadd.f32 %v3727_v6, %v3712_v28 }
 0x316   : > { %v3714_v48 = vpop.f32.mrf.mxu1 }
 0x317   : > { %v3731_v53 = vadd.f32 %v3730_v1, %v3729_v46 }
 0x318   : > { %v4639_v5 = vpop.f32.mrf.mxu1 }
 0x319   : > { %v3732_v2 = vmax.f32 %v3731_v53, 0.0 }
 0x31b   : > { %v3733_v54 = vpack.c.bf16 %v3732_v2, %v3732_v2 }
 0x31d   : > { %4657 = vmatmul.mubr.bf16.vlgmr.msra.gmra.mxu1 %v3733_v54 }
 0x3dd   : > { %v3833_v40 = vpop.f32.mrf.mxu1 }
 0x3de   : > { %v3834_v56 = vadd.f32 %v3833_v40, %v3750_v30 }
 0x3df   : > { %v4658_v58 = vpop.f32.mrf.mxu1 }
 0x3e0   : > { %3839 = vst [vmem:[%s362_s28] sm:$0x1] %v3834_v56 }
 0x3e1   : > { %v3836_v22 = vpop.f32.mrf.mxu1 }
 0x3e2   : > { %4744 = shalt.err (!%p4741_p3)
}
 0x3e3   : > { %s4745_s27 = scalar_lea.hbm %s6571_s30, 16  ;;  %s4749_s29 = scalar_lea.hbm %s6622_s10, 32 }
 0x3e4   : > { %p4746_p4 = scmp.ne.s32.totalorder %s6571_s30, %s4745_s27  ;;  %p4750_p9 = scmp.lt.s32.totalorder %s6571_s30, %s6622_s10 }
 0x3e5   : > { %p4751_p10 = scmp.lt.s32.totalorder %s4749_s29, %s4745_s27 }
 0x3e6   : > { %p4747_p7 = pnand %p4746_p4, %p4891_p5 }
 0x3e7   : > { %p4752_p11 = por %p4751_p10, %p4750_p9 }
 0x3e8   : > { %p4748_p8 = pneg %p4747_p7 }
 0x3ea   : > { %p4753_p12 = pnand %p4752_p11, %p4748_p8 }
 0x3ec   : > { %4756 = shalt.err (!%p4753_p12)
}
 0x3ed   : > { %4673 = dma.vmem_to_hbm [thread:$0]  (%p4891_p5), %s6573_s11, 16, %s6571_s30, %s3841_s12   ;;  %v4659_v47 = vpop.f32.mrf.mxu1 }
 0x3ee PF: > { %p4679_p13 = scmp.ge.s32.totalorder %s4791_s16, 2  ;;  %s3865_s18 = sand.u32 1, %s4779_s13  }
 0x3ef   : > { %s3866_s25 = scalar_lea.sflag [#allocation3], %s3865_s18 }
 0x3f0   : > { %p4676_p0 = pnand %p4679_p13, %p4895_p6 }
 0x3f2   : > { %p4677_p1 = pneg %p4676_p0 }
 0x3f4   : > { %4774 = dma.done.wait (%p4677_p1), %s3866_s25, 16  }
 0x3f5   : > { %4776 = vsyncadd (%p4677_p1), %s3866_s25, 4294967280  ;;  %p20_p2 = scmp.ge.s32.totalorder %s4878_s19, 4   ;;  %s6660_s13 = smov %s4783_s14 }
 0x3f6   : > { %s6661_s14 = smov %s4787_s15  ;;  %s6662_s15 = smov %s4889_s22 }
 0x3f7   : > { %s6663_s16 = smov %s4878_s19  ;;  %22 = sbr.rel (!%p20_p2) target bundleno = 3 (0x3), region = 106 }
 0x3fc   :  { %3870 = vsyncpa [#allocation3], 1 }
 0x3fd   :  { %3872 = vsyncpa [#allocation3 + $0x1], 1 }

</bundles_post_ra>
